<compile_context>
chip_gen: v6e
topology: v6e:2x2x1
jax: 0.10.0
libtpu: 0.0.40
codegen_flags: <defaults>
</compile_context>

<pallas_src>
import functools
import math
import numpy as np
import jax
import jax.numpy as jnp
from jax import lax
from jax.experimental import pallas as pl
from jax.experimental.pallas import tpu as pltpu


# ----------------------------- Pallas kernels ------------------------------

def _block_stride1_kernel(x_ref, w1_ref, w2_ref, s1_ref, b1_ref, s2_ref, b2_ref,
                          out_ref, h1pad_ref, h2pad_ref, *, H, W, C):
    """Fully-fused BasicBlock, stride 1, identity shortcut (in == out planes).

    Per grid step: `tb` whole images.  BN1+ReLU, conv1 (3x3, pad 1), BN2+ReLU,
    conv2 (3x3, pad 1) and the residual add all happen in-kernel; the two 3x3
    gathers use zero-padded VMEM scratches and 9 shifted-tap MXU dots each
    (bf16 operands, f32 accumulation).
    """
    tb = x_ref.shape[0]
    M = tb * H * W
    w1 = w1_ref[...]                       # (9C, C) bf16
    w2 = w2_ref[...]                       # (9C, C) bf16

    # ---- BN1 + ReLU (f32, in-kernel; padding stays post-activation zero) ----
    x2d = x_ref[...].reshape(M, C)         # f32 residual stream
    h1 = jnp.maximum(x2d * s1_ref[...] + b1_ref[...], 0.0)

    h1pad_ref[...] = jnp.zeros(h1pad_ref.shape, h1pad_ref.dtype)
    h1pad_ref[:, 1:H + 1, 1:W + 1, :] = h1.reshape(tb, H, W, C)

    # ---- conv1 (3x3, stride 1, pad 1): 9 shifted-tap MXU dots ----
    acc1 = jnp.zeros((M, C), jnp.float32)
    for k in range(9):
        di, dj = k // 3, k % 3
        tap = h1pad_ref[:, di:di + H, dj:dj + W, :].reshape(M, C)
        acc1 = acc1 + jnp.dot(tap.astype(jnp.bfloat16), w1[k * C:(k + 1) * C, :],
                              preferred_element_type=jnp.float32)

    # ---- BN2 + ReLU ----
    h2 = jnp.maximum(acc1 * s2_ref[...] + b2_ref[...], 0.0)
    h2pad_ref[...] = jnp.zeros(h2pad_ref.shape, h2pad_ref.dtype)
    h2pad_ref[:, 1:H + 1, 1:W + 1, :] = h2.reshape(tb, H, W, C)

    # ---- conv2 (3x3, stride 1, pad 1) + fused identity-shortcut add ----
    acc2 = x2d                             # identity shortcut (f32)
    for k in range(9):
        di, dj = k // 3, k % 3
        tap = h2pad_ref[:, di:di + H, dj:dj + W, :].reshape(M, C)
        acc2 = acc2 + jnp.dot(tap.astype(jnp.bfloat16), w2[k * C:(k + 1) * C, :],
                              preferred_element_type=jnp.float32)

    out_ref[...] = acc2.reshape(tb, H, W, C).astype(out_ref.dtype)


def _block_proj_kernel(m1_ref, wc_ref, w2_ref, s2_ref, b2_ref,
                       out_ref, h2pad_ref, *, Ho, Wo, cout):
    """First (possibly strided) BasicBlock with 1x1 projection shortcut.

    conv1 and the 1x1 strided shortcut are ONE matmul against the combined
    weight [w1 | zero-padded w_short]: the shortcut's input h1[:, ::s, ::s, :]
    is exactly the center-tap columns of the im2col matrix.  BN2+ReLU, conv2
    (in-kernel 3x3 gather) and the residual add are fused on top.
    """
    tb = out_ref.shape[0]
    M = tb * Ho * Wo

    acc = jnp.dot(m1_ref[...], wc_ref[...], preferred_element_type=jnp.float32)
    h = acc[:, :cout]                      # conv1 output
    shortcut = acc[:, cout:]               # 1x1 strided projection shortcut

    # ---- BN2 + ReLU ----
    h2 = jnp.maximum(h * s2_ref[...] + b2_ref[...], 0.0)
    h2pad_ref[...] = jnp.zeros(h2pad_ref.shape, h2pad_ref.dtype)
    h2pad_ref[:, 1:Ho + 1, 1:Wo + 1, :] = h2.reshape(tb, Ho, Wo, cout)

    # ---- conv2 (3x3, stride 1, pad 1) + fused residual add ----
    w2 = w2_ref[...]                       # (9*cout, cout) bf16
    acc2 = shortcut
    for k in range(9):
        di, dj = k // 3, k % 3
        tap = h2pad_ref[:, di:di + Ho, dj:dj + Wo, :].reshape(M, cout)
        acc2 = acc2 + jnp.dot(tap.astype(jnp.bfloat16), w2[k * cout:(k + 1) * cout, :],
                              preferred_element_type=jnp.float32)

    out_ref[...] = acc2.reshape(tb, Ho, Wo, cout).astype(out_ref.dtype)


# ------------------------------ JAX wrappers --------------------------------

# Scoped-VMEM limit raised past the defaults (v5e 16 MiB, v6e/v7x 32 MiB), kept
# under v7x's 64 MiB physical per-TC VMEM.
_VMEM_LIMIT_BYTES = 48 * 1024 * 1024


def _compiler_params():
    return pltpu.CompilerParams(dimension_semantics=("parallel",),
                                vmem_limit_bytes=_VMEM_LIMIT_BYTES)


def _pick_tb(N, per_image_bytes):
    """Images per grid step: largest batch tile whose double-buffered footprint
    stays well inside the scoped-VMEM budget, while leaving >= 2 grid steps for
    the v7x megacore whenever N >= 2 (on v5e/v6e extra steps are just a loop)."""
    budget = _VMEM_LIMIT_BYTES // 3        # headroom for double-buffered IO + scratch
    tb = max(1, min(N, budget // max(per_image_bytes, 1)))
    if N >= 2:
        tb = min(tb, N // 2)
    while N % tb:
        tb -= 1
    return max(tb, 1)


def _fold_bn(gamma, beta, mean, var, eps=1e-5):
    # Inference-mode BN folded to per-channel affine: y = x * scale + shift.
    inv = gamma * lax.rsqrt(var + eps)
    return inv, beta - mean * inv


def _im2col(x, kh, kw, stride, pad):
    """x: (N,H,W,C) -> (N*Ho*Wo, kh*kw*C).  XLA glue, used only for the first
    (possibly strided) block's conv1, whose input comes from HBM anyway."""
    N, H, W, C = x.shape
    Ho = (H + 2 * pad - kh) // stride + 1
    Wo = (W + 2 * pad - kw) // stride + 1
    xp = jnp.pad(x, ((0, 0), (pad, pad), (pad, pad), (0, 0)))
    cols = [
        lax.slice(xp, (0, i, j, 0),
                  (N, i + stride * (Ho - 1) + 1, j + stride * (Wo - 1) + 1, C),
                  (1, stride, stride, 1))
        for i in range(kh) for j in range(kw)
    ]
    patches = jnp.concatenate(cols, axis=-1)                 # (N, Ho, Wo, kh*kw*C)
    return patches.reshape(N * Ho * Wo, kh * kw * C), (Ho, Wo)


def _basic_block_stride1(x, p):
    """Fully-fused BasicBlock with identity shortcut (in == out planes, stride 1)."""
    N, H, W, C = x.shape
    s1, b1 = _fold_bn(p["bn1_g"], p["bn1_b"], p["bn1_m"], p["bn1_v"])
    s2, b2 = _fold_bn(p["bn2_g"], p["bn2_b"], p["bn2_m"], p["bn2_v"])
    w1 = p["w1"].reshape(9 * C, C).astype(jnp.bfloat16)
    w2 = p["w2"].reshape(9 * C, C).astype(jnp.bfloat16)

    per_image = H * W * C * 8 + 2 * (H + 2) * (W + 2) * C * 4   # x/out f32 + 2 pads
    tb = _pick_tb(N, per_image)
    grid = (N // tb,)

    kernel = functools.partial(_block_stride1_kernel, H=H, W=W, C=C)
    return pl.pallas_call(
        kernel,
        grid=grid,
        in_specs=[
            pl.BlockSpec((tb, H, W, C), lambda i: (i, 0, 0, 0)),
            pl.BlockSpec((9 * C, C), lambda i: (0, 0)),
            pl.BlockSpec((9 * C, C), lambda i: (0, 0)),
            pl.BlockSpec((1, C), lambda i: (0, 0)),
            pl.BlockSpec((1, C), lambda i: (0, 0)),
            pl.BlockSpec((1, C), lambda i: (0, 0)),
            pl.BlockSpec((1, C), lambda i: (0, 0)),
        ],
        out_specs=pl.BlockSpec((tb, H, W, C), lambda i: (i, 0, 0, 0)),
        out_shape=jax.ShapeDtypeStruct((N, H, W, C), jnp.float32),
        scratch_shapes=[pltpu.VMEM((tb, H + 2, W + 2, C), jnp.float32),
                        pltpu.VMEM((tb, H + 2, W + 2, C), jnp.float32)],
        compiler_params=_compiler_params(),
    )(x, w1, w2, s1.reshape(1, C), b1.reshape(1, C), s2.reshape(1, C), b2.reshape(1, C))


def _basic_block_proj(x, p, stride):
    """First BasicBlock with 1x1 strided projection shortcut (in != out planes)."""
    N, H, W, cin = x.shape
    cout = p["w1"].shape[3]
    s1, b1 = _fold_bn(p["bn1_g"], p["bn1_b"], p["bn1_m"], p["bn1_v"])
    s2, b2 = _fold_bn(p["bn2_g"], p["bn2_b"], p["bn2_m"], p["bn2_v"])

    # BN1+ReLU + strided 3x3 patch extraction stay in XLA glue for this block
    # only (input is read from HBM anyway; avoids in-kernel strided loads).
    h1 = jnp.maximum(x * s1 + b1, 0.0).astype(jnp.bfloat16)
    m1, (Ho, Wo) = _im2col(h1, 3, 3, stride, 1)              # (N*Ho*Wo, 9*cin) bf16

    # Combined weight [w1 | rows 4*cin:5*cin = w_short, else 0] -> ONE dot yields
    # conv1 output AND the 1x1 strided shortcut (center-tap columns of m1).
    w1 = p["w1"].reshape(9 * cin, cout)
    ws = p["w_short"].reshape(cin, cout)
    wc = jnp.zeros((9 * cin, 2 * cout), jnp.float32)
    wc = wc.at[:, :cout].set(w1).at[4 * cin:5 * cin, cout:].set(ws).astype(jnp.bfloat16)
    w2 = p["w2"].reshape(9 * cout, cout).astype(jnp.bfloat16)

    per_image = Ho * Wo * (9 * cin * 2 + cout * 4) + (Ho + 2) * (Wo + 2) * cout * 4
    tb = _pick_tb(N, per_image)
    grid = (N // tb,)
    Mt = tb * Ho * Wo

    kernel = functools.partial(_block_proj_kernel, Ho=Ho, Wo=Wo, cout=cout)
    return pl.pallas_call(
        kernel,
        grid=grid,
        in_specs=[
            pl.BlockSpec((Mt, 9 * cin), lambda i: (i, 0)),
            pl.BlockSpec((9 * cin, 2 * cout), lambda i: (0, 0)),
            pl.BlockSpec((9 * cout, cout), lambda i: (0, 0)),
            pl.BlockSpec((1, cout), lambda i: (0, 0)),
            pl.BlockSpec((1, cout), lambda i: (0, 0)),
        ],
        out_specs=pl.BlockSpec((tb, Ho, Wo, cout), lambda i: (i, 0, 0, 0)),
        out_shape=jax.ShapeDtypeStruct((N, Ho, Wo, cout), jnp.float32),
        scratch_shapes=[pltpu.VMEM((tb, Ho + 2, Wo + 2, cout), jnp.float32)],
        compiler_params=_compiler_params(),
    )(m1, wc, w2, s2.reshape(1, cout), b2.reshape(1, cout))


def network_block(x, params, stride):
    """x: (N, H, W, Cin) NHWC f32.  Forward pass of NetworkBlock (BasicBlock stack)."""
    out = x
    for i, p in enumerate(params):
        s = stride if i == 0 else 1
        cin, cout = p["w1"].shape[2], p["w1"].shape[3]
        if cin == cout:
            assert s == 1, "identity shortcut requires stride 1 (as in the PyTorch module)"
            out = _basic_block_stride1(out, p)
        else:
            out = _basic_block_proj(out, p, s)
    return out


# ---------------------------- parameter setup -------------------------------

def init_params(key, nb_layers, in_planes, out_planes):
    params = []
    for i in range(nb_layers):
        cin = in_planes if i == 0 else out_planes
        cout = out_planes
        key, *ks = jax.random.split(key, 12)
        p = {
            "bn1_g": 1.0 + 0.1 * jax.random.normal(ks[0], (cin,), jnp.float32),
            "bn1_b": 0.1 * jax.random.normal(ks[1], (cin,), jnp.float32),
            "bn1_m": 0.1 * jax.random.normal(ks[2], (cin,), jnp.float32),
            "bn1_v": 0.5 + jax.nn.softplus(jax.random.normal(ks[3], (cin,), jnp.float32)),
            "w1": jax.random.normal(ks[4], (3, 3, cin, cout), jnp.float32)
                  * math.sqrt(2.0 / (9 * cout)),
            "bn2_g": 1.0 + 0.1 * jax.random.normal(ks[5], (cout,), jnp.float32),
            "bn2_b": 0.1 * jax.random.normal(ks[6], (cout,), jnp.float32),
            "bn2_m": 0.1 * jax.random.normal(ks[7], (cout,), jnp.float32),
            "bn2_v": 0.5 + jax.nn.softplus(jax.random.normal(ks[8], (cout,), jnp.float32)),
            "w2": jax.random.normal(ks[9], (3, 3, cout, cout), jnp.float32)
                  * math.sqrt(2.0 / (9 * cout)),
        }
        if cin != cout:
            p["w_short"] = (jax.random.normal(ks[10], (1, 1, cin, cout), jnp.float32)
                            * math.sqrt(2.0 / cout))
        params.append(p)
    return params


# ------------------------- pure-JAX reference check --------------------------

def _ref_bn_relu(x, g, b, m, v, eps=1e-5):
    scale, shift = _fold_bn(g, b, m, v, eps)
    return jnp.maximum(x * scale + shift, 0.0)


def _ref_conv(x, w, stride, pad):
    # Matches the kernel's MXU numerics: bf16 operands, f32 accumulation.
    return lax.conv_general_dilated(
        x.astype(jnp.bfloat16), w.astype(jnp.bfloat16),
        (stride, stride), [(pad, pad), (pad, pad)],
        dimension_numbers=("NHWC", "HWIO", "NHWC"),
        preferred_element_type=jnp.float32,
        precision=lax.Precision.HIGHEST)


def _ref_network_block(x, params, stride):
    out = x
    for i, p in enumerate(params):
        s = stride if i == 0 else 1
        cin, cout = p["w1"].shape[2], p["w1"].shape[3]
        h = _ref_bn_relu(out, p["bn1_g"], p["bn1_b"], p["bn1_m"], p["bn1_v"])
        shortcut = out if cin == cout else _ref_conv(h, p["w_short"], s, 0)
        h = _ref_conv(h, p["w1"], s, 1)
        h = _ref_bn_relu(h, p["bn2_g"], p["bn2_b"], p["bn2_m"], p["bn2_v"])
        h = _ref_conv(h, p["w2"], 1, 1)
        out = shortcut + h
    return out


# ----------------------------------- main ------------------------------------

if __name__ == "__main__":
    key = jax.random.PRNGKey(0)
    kx, kp = jax.random.split(key)

    # NetworkBlock(nb_layers=2, in_planes=4, out_planes=8, block=BasicBlock, stride=2)
    N, C_IN, H, W = 2, 4, 16, 16
    C_OUT, NB_LAYERS, STRIDE = 8, 2, 2

    x_nchw = jax.random.normal(kx, (N, C_IN, H, W), jnp.float32)   # PyTorch layout
    x_nhwc = jnp.transpose(x_nchw, (0, 2, 3, 1))                   # kernel layout (NHWC)

    params = init_params(kp, NB_LAYERS, C_IN, C_OUT)

    fwd = jax.jit(network_block, static_argnums=(2,))
    out = jax.block_until_ready(fwd(x_nhwc, params, STRIDE))

    assert out.shape == (N, H // STRIDE, W // STRIDE, C_OUT), out.shape

    # Reference uses the same bf16-operand / f32-accumulate conv numerics.
    ref = _ref_network_block(x_nhwc, params, STRIDE)
    np.testing.assert_allclose(np.asarray(out), np.asarray(ref), rtol=2e-2, atol=2e-2)

    print("KERNEL_OK")
</pallas_src>

<mosaic_0001>
module attributes {stable_mosaic.version = 11 : i64} {
  func.func @_block_stride1_kernel(%arg0: i32, %arg1: memref<1x8x8x8xf32, #tpu.memory_space<vmem>>, %arg2: memref<72x8xbf16, #tpu.memory_space<vmem>>, %arg3: memref<72x8xbf16, #tpu.memory_space<vmem>>, %arg4: memref<1x8xf32, #tpu.memory_space<vmem>>, %arg5: memref<1x8xf32, #tpu.memory_space<vmem>>, %arg6: memref<1x8xf32, #tpu.memory_space<vmem>>, %arg7: memref<1x8xf32, #tpu.memory_space<vmem>>, %arg8: memref<1x8x8x8xf32, #tpu.memory_space<vmem>>, %arg9: memref<1x10x10x8xf32, #tpu.memory_space<vmem>>, %arg10: memref<1x10x10x8xf32, #tpu.memory_space<vmem>>) attributes {dimension_semantics = [#tpu.dimension_semantics<parallel>], iteration_bounds = array<i64: 2>, scalar_prefetch = 0 : i64, scratch_operands = 2 : i64, tpu.core_type = #tpu.core_type<tc>, window_params = [{transform_indices = @transform_0, window_bounds = array<i64: 1, 8, 8, 8>}, {pipeline_mode = #tpu.pipeline_mode<synchronous>, transform_indices = @transform_1, window_bounds = array<i64: 72, 8>}, {pipeline_mode = #tpu.pipeline_mode<synchronous>, transform_indices = @transform_2, window_bounds = array<i64: 72, 8>}, {pipeline_mode = #tpu.pipeline_mode<synchronous>, transform_indices = @transform_3, window_bounds = array<i64: 1, 8>}, {pipeline_mode = #tpu.pipeline_mode<synchronous>, transform_indices = @transform_4, window_bounds = array<i64: 1, 8>}, {pipeline_mode = #tpu.pipeline_mode<synchronous>, transform_indices = @transform_5, window_bounds = array<i64: 1, 8>}, {pipeline_mode = #tpu.pipeline_mode<synchronous>, transform_indices = @transform_6, window_bounds = array<i64: 1, 8>}, {transform_indices = @transform_7, window_bounds = array<i64: 1, 8, 8, 8>}]} {
    %c0 = arith.constant 0 : index
    %c0_0 = arith.constant 0 : index
    %0 = vector.load %arg2[%c0, %c0_0] : memref<72x8xbf16, #tpu.memory_space<vmem>>, vector<72x8xbf16>
    %c0_1 = arith.constant 0 : index
    %c0_2 = arith.constant 0 : index
    %1 = vector.load %arg3[%c0_1, %c0_2] : memref<72x8xbf16, #tpu.memory_space<vmem>>, vector<72x8xbf16>
    %c0_3 = arith.constant 0 : index
    %c0_4 = arith.constant 0 : index
    %c0_5 = arith.constant 0 : index
    %c0_6 = arith.constant 0 : index
    %2 = vector.load %arg1[%c0_3, %c0_4, %c0_5, %c0_6] : memref<1x8x8x8xf32, #tpu.memory_space<vmem>>, vector<1x8x8x8xf32>
    %3 = vector.shape_cast %2 : vector<1x8x8x8xf32> to vector<64x8xf32>
    %c0_7 = arith.constant 0 : index
    %c0_8 = arith.constant 0 : index
    %4 = vector.load %arg4[%c0_7, %c0_8] : memref<1x8xf32, #tpu.memory_space<vmem>>, vector<1x8xf32>
    %5 = vector.broadcast %4 : vector<1x8xf32> to vector<64x8xf32>
    %6 = arith.mulf %3, %5 : vector<64x8xf32>
    %c0_9 = arith.constant 0 : index
    %c0_10 = arith.constant 0 : index
    %7 = vector.load %arg5[%c0_9, %c0_10] : memref<1x8xf32, #tpu.memory_space<vmem>>, vector<1x8xf32>
    %8 = vector.broadcast %7 : vector<1x8xf32> to vector<64x8xf32>
    %9 = arith.addf %6, %8 : vector<64x8xf32>
    %cst = arith.constant 0.000000e+00 : f32
    %10 = vector.broadcast %cst : f32 to vector<64x8xf32>
    %11 = arith.maximumf %9, %10 : vector<64x8xf32>
    %cst_11 = arith.constant 0.000000e+00 : f32
    %12 = vector.broadcast %cst_11 : f32 to vector<1x10x10x8xf32>
    %c0_12 = arith.constant 0 : index
    %c0_13 = arith.constant 0 : index
    %c0_14 = arith.constant 0 : index
    %c0_15 = arith.constant 0 : index
    %13 = vector.load %arg9[%c0_12, %c0_13, %c0_14, %c0_15] : memref<1x10x10x8xf32, #tpu.memory_space<vmem>>, vector<1x10x10x8xf32>
    tpu.vector_store %arg9[%c0_12, %c0_13, %c0_14, %c0_15], %12 {strides = array<i32>} : memref<1x10x10x8xf32, #tpu.memory_space<vmem>>, vector<1x10x10x8xf32>,
    %14 = vector.shape_cast %11 : vector<64x8xf32> to vector<1x8x8x8xf32>
    %c0_16 = arith.constant 0 : index
    %c1 = arith.constant 1 : index
    %c1_17 = arith.constant 1 : index
    %c0_18 = arith.constant 0 : index
    %15 = vector.load %arg9[%c0_16, %c1, %c1_17, %c0_18] : memref<1x10x10x8xf32, #tpu.memory_space<vmem>>, vector<1x8x8x8xf32>
    tpu.vector_store %arg9[%c0_16, %c1, %c1_17, %c0_18], %14 {strides = array<i32>} : memref<1x10x10x8xf32, #tpu.memory_space<vmem>>, vector<1x8x8x8xf32>,
    %cst_19 = arith.constant 0.000000e+00 : f32
    %16 = vector.broadcast %cst_19 : f32 to vector<64x8xf32>
    %c0_20 = arith.constant 0 : index
    %c0_21 = arith.constant 0 : index
    %c0_22 = arith.constant 0 : index
    %c0_23 = arith.constant 0 : index
    %17 = vector.load %arg9[%c0_20, %c0_21, %c0_22, %c0_23] : memref<1x10x10x8xf32, #tpu.memory_space<vmem>>, vector<1x8x8x8xf32>
    %18 = vector.shape_cast %17 : vector<1x8x8x8xf32> to vector<64x8xf32>
    %19 = arith.truncf %18 : vector<64x8xf32> to vector<64x8xbf16>
    %20 = vector.extract_strided_slice %0 {offsets = [0, 0], sizes = [8, 8], strides = [1, 1]} : vector<72x8xbf16> to vector<8x8xbf16>
    %cst_24 = arith.constant dense<0.000000e+00> : vector<64x8xf32>
    %21 = tpu.matmul %19, %20, %cst_24 {dimension_numbers = #tpu.dot_dimension_numbers<[1], [0], [0], [1], [0, 0, 1, 1], [], []>} : vector<64x8xbf16>, vector<8x8xbf16>, vector<64x8xf32> -> vector<64x8xf32>
    %22 = arith.addf %16, %21 : vector<64x8xf32>
    %c0_25 = arith.constant 0 : index
    %c0_26 = arith.constant 0 : index
    %c1_27 = arith.constant 1 : index
    %c0_28 = arith.constant 0 : index
    %23 = vector.load %arg9[%c0_25, %c0_26, %c1_27, %c0_28] : memref<1x10x10x8xf32, #tpu.memory_space<vmem>>, vector<1x8x8x8xf32>
    %24 = vector.shape_cast %23 : vector<1x8x8x8xf32> to vector<64x8xf32>
    %25 = arith.truncf %24 : vector<64x8xf32> to vector<64x8xbf16>
    %26 = vector.extract_strided_slice %0 {offsets = [8, 0], sizes = [8, 8], strides = [1, 1]} : vector<72x8xbf16> to vector<8x8xbf16>
    %cst_29 = arith.constant dense<0.000000e+00> : vector<64x8xf32>
    %27 = tpu.matmul %25, %26, %cst_29 {dimension_numbers = #tpu.dot_dimension_numbers<[1], [0], [0], [1], [0, 0, 1, 1], [], []>} : vector<64x8xbf16>, vector<8x8xbf16>, vector<64x8xf32> -> vector<64x8xf32>
    %28 = arith.addf %22, %27 : vector<64x8xf32>
    %c0_30 = arith.constant 0 : index
    %c0_31 = arith.constant 0 : index
    %c2 = arith.constant 2 : index
    %c0_32 = arith.constant 0 : index
    %29 = vector.load %arg9[%c0_30, %c0_31, %c2, %c0_32] : memref<1x10x10x8xf32, #tpu.memory_space<vmem>>, vector<1x8x8x8xf32>
    %30 = vector.shape_cast %29 : vector<1x8x8x8xf32> to vector<64x8xf32>
    %31 = arith.truncf %30 : vector<64x8xf32> to vector<64x8xbf16>
    %32 = vector.extract_strided_slice %0 {offsets = [16, 0], sizes = [8, 8], strides = [1, 1]} : vector<72x8xbf16> to vector<8x8xbf16>
    %cst_33 = arith.constant dense<0.000000e+00> : vector<64x8xf32>
    %33 = tpu.matmul %31, %32, %cst_33 {dimension_numbers = #tpu.dot_dimension_numbers<[1], [0], [0], [1], [0, 0, 1, 1], [], []>} : vector<64x8xbf16>, vector<8x8xbf16>, vector<64x8xf32> -> vector<64x8xf32>
    %34 = arith.addf %28, %33 : vector<64x8xf32>
    %c0_34 = arith.constant 0 : index
    %c1_35 = arith.constant 1 : index
    %c0_36 = arith.constant 0 : index
    %c0_37 = arith.constant 0 : index
    %35 = vector.load %arg9[%c0_34, %c1_35, %c0_36, %c0_37] : memref<1x10x10x8xf32, #tpu.memory_space<vmem>>, vector<1x8x8x8xf32>
    %36 = vector.shape_cast %35 : vector<1x8x8x8xf32> to vector<64x8xf32>
    %37 = arith.truncf %36 : vector<64x8xf32> to vector<64x8xbf16>
    %38 = vector.extract_strided_slice %0 {offsets = [24, 0], sizes = [8, 8], strides = [1, 1]} : vector<72x8xbf16> to vector<8x8xbf16>
    %cst_38 = arith.constant dense<0.000000e+00> : vector<64x8xf32>
    %39 = tpu.matmul %37, %38, %cst_38 {dimension_numbers = #tpu.dot_dimension_numbers<[1], [0], [0], [1], [0, 0, 1, 1], [], []>} : vector<64x8xbf16>, vector<8x8xbf16>, vector<64x8xf32> -> vector<64x8xf32>
    %40 = arith.addf %34, %39 : vector<64x8xf32>
    %c0_39 = arith.constant 0 : index
    %c1_40 = arith.constant 1 : index
    %c1_41 = arith.constant 1 : index
    %c0_42 = arith.constant 0 : index
    %41 = vector.load %arg9[%c0_39, %c1_40, %c1_41, %c0_42] : memref<1x10x10x8xf32, #tpu.memory_space<vmem>>, vector<1x8x8x8xf32>
    %42 = vector.shape_cast %41 : vector<1x8x8x8xf32> to vector<64x8xf32>
    %43 = arith.truncf %42 : vector<64x8xf32> to vector<64x8xbf16>
    %44 = vector.extract_strided_slice %0 {offsets = [32, 0], sizes = [8, 8], strides = [1, 1]} : vector<72x8xbf16> to vector<8x8xbf16>
    %cst_43 = arith.constant dense<0.000000e+00> : vector<64x8xf32>
    %45 = tpu.matmul %43, %44, %cst_43 {dimension_numbers = #tpu.dot_dimension_numbers<[1], [0], [0], [1], [0, 0, 1, 1], [], []>} : vector<64x8xbf16>, vector<8x8xbf16>, vector<64x8xf32> -> vector<64x8xf32>
    %46 = arith.addf %40, %45 : vector<64x8xf32>
    %c0_44 = arith.constant 0 : index
    %c1_45 = arith.constant 1 : index
    %c2_46 = arith.constant 2 : index
    %c0_47 = arith.constant 0 : index
    %47 = vector.load %arg9[%c0_44, %c1_45, %c2_46, %c0_47] : memref<1x10x10x8xf32, #tpu.memory_space<vmem>>, vector<1x8x8x8xf32>
    %48 = vector.shape_cast %47 : vector<1x8x8x8xf32> to vector<64x8xf32>
    %49 = arith.truncf %48 : vector<64x8xf32> to vector<64x8xbf16>
    %50 = vector.extract_strided_slice %0 {offsets = [40, 0], sizes = [8, 8], strides = [1, 1]} : vector<72x8xbf16> to vector<8x8xbf16>
    %cst_48 = arith.constant dense<0.000000e+00> : vector<64x8xf32>
    %51 = tpu.matmul %49, %50, %cst_48 {dimension_numbers = #tpu.dot_dimension_numbers<[1], [0], [0], [1], [0, 0, 1, 1], [], []>} : vector<64x8xbf16>, vector<8x8xbf16>, vector<64x8xf32> -> vector<64x8xf32>
    %52 = arith.addf %46, %51 : vector<64x8xf32>
    %c0_49 = arith.constant 0 : index
    %c2_50 = arith.constant 2 : index
    %c0_51 = arith.constant 0 : index
    %c0_52 = arith.constant 0 : index
    %53 = vector.load %arg9[%c0_49, %c2_50, %c0_51, %c0_52] : memref<1x10x10x8xf32, #tpu.memory_space<vmem>>, vector<1x8x8x8xf32>
    %54 = vector.shape_cast %53 : vector<1x8x8x8xf32> to vector<64x8xf32>
    %55 = arith.truncf %54 : vector<64x8xf32> to vector<64x8xbf16>
    %56 = vector.extract_strided_slice %0 {offsets = [48, 0], sizes = [8, 8], strides = [1, 1]} : vector<72x8xbf16> to vector<8x8xbf16>
    %cst_53 = arith.constant dense<0.000000e+00> : vector<64x8xf32>
    %57 = tpu.matmul %55, %56, %cst_53 {dimension_numbers = #tpu.dot_dimension_numbers<[1], [0], [0], [1], [0, 0, 1, 1], [], []>} : vector<64x8xbf16>, vector<8x8xbf16>, vector<64x8xf32> -> vector<64x8xf32>
    %58 = arith.addf %52, %57 : vector<64x8xf32>
    %c0_54 = arith.constant 0 : index
    %c2_55 = arith.constant 2 : index
    %c1_56 = arith.constant 1 : index
    %c0_57 = arith.constant 0 : index
    %59 = vector.load %arg9[%c0_54, %c2_55, %c1_56, %c0_57] : memref<1x10x10x8xf32, #tpu.memory_space<vmem>>, vector<1x8x8x8xf32>
    %60 = vector.shape_cast %59 : vector<1x8x8x8xf32> to vector<64x8xf32>
    %61 = arith.truncf %60 : vector<64x8xf32> to vector<64x8xbf16>
    %62 = vector.extract_strided_slice %0 {offsets = [56, 0], sizes = [8, 8], strides = [1, 1]} : vector<72x8xbf16> to vector<8x8xbf16>
    %cst_58 = arith.constant dense<0.000000e+00> : vector<64x8xf32>
    %63 = tpu.matmul %61, %62, %cst_58 {dimension_numbers = #tpu.dot_dimension_numbers<[1], [0], [0], [1], [0, 0, 1, 1], [], []>} : vector<64x8xbf16>, vector<8x8xbf16>, vector<64x8xf32> -> vector<64x8xf32>
    %64 = arith.addf %58, %63 : vector<64x8xf32>
    %c0_59 = arith.constant 0 : index
    %c2_60 = arith.constant 2 : index
    %c2_61 = arith.constant 2 : index
    %c0_62 = arith.constant 0 : index
    %65 = vector.load %arg9[%c0_59, %c2_60, %c2_61, %c0_62] : memref<1x10x10x8xf32, #tpu.memory_space<vmem>>, vector<1x8x8x8xf32>
    %66 = vector.shape_cast %65 : vector<1x8x8x8xf32> to vector<64x8xf32>
    %67 = arith.truncf %66 : vector<64x8xf32> to vector<64x8xbf16>
    %68 = vector.extract_strided_slice %0 {offsets = [64, 0], sizes = [8, 8], strides = [1, 1]} : vector<72x8xbf16> to vector<8x8xbf16>
    %cst_63 = arith.constant dense<0.000000e+00> : vector<64x8xf32>
    %69 = tpu.matmul %67, %68, %cst_63 {dimension_numbers = #tpu.dot_dimension_numbers<[1], [0], [0], [1], [0, 0, 1, 1], [], []>} : vector<64x8xbf16>, vector<8x8xbf16>, vector<64x8xf32> -> vector<64x8xf32>
    %70 = arith.addf %64, %69 : vector<64x8xf32>
    %c0_64 = arith.constant 0 : index
    %c0_65 = arith.constant 0 : index
    %71 = vector.load %arg6[%c0_64, %c0_65] : memref<1x8xf32, #tpu.memory_space<vmem>>, vector<1x8xf32>
    %72 = vector.broadcast %71 : vector<1x8xf32> to vector<64x8xf32>
    %73 = arith.mulf %70, %72 : vector<64x8xf32>
    %c0_66 = arith.constant 0 : index
    %c0_67 = arith.constant 0 : index
    %74 = vector.load %arg7[%c0_66, %c0_67] : memref<1x8xf32, #tpu.memory_space<vmem>>, vector<1x8xf32>
    %75 = vector.broadcast %74 : vector<1x8xf32> to vector<64x8xf32>
    %76 = arith.addf %73, %75 : vector<64x8xf32>
    %cst_68 = arith.constant 0.000000e+00 : f32
    %77 = vector.broadcast %cst_68 : f32 to vector<64x8xf32>
    %78 = arith.maximumf %76, %77 : vector<64x8xf32>
    %cst_69 = arith.constant 0.000000e+00 : f32
    %79 = vector.broadcast %cst_69 : f32 to vector<1x10x10x8xf32>
    %c0_70 = arith.constant 0 : index
    %c0_71 = arith.constant 0 : index
    %c0_72 = arith.constant 0 : index
    %c0_73 = arith.constant 0 : index
    %80 = vector.load %arg10[%c0_70, %c0_71, %c0_72, %c0_73] : memref<1x10x10x8xf32, #tpu.memory_space<vmem>>, vector<1x10x10x8xf32>
    tpu.vector_store %arg10[%c0_70, %c0_71, %c0_72, %c0_73], %79 {strides = array<i32>} : memref<1x10x10x8xf32, #tpu.memory_space<vmem>>, vector<1x10x10x8xf32>,
    %81 = vector.shape_cast %78 : vector<64x8xf32> to vector<1x8x8x8xf32>
    %c0_74 = arith.constant 0 : index
    %c1_75 = arith.constant 1 : index
    %c1_76 = arith.constant 1 : index
    %c0_77 = arith.constant 0 : index
    %82 = vector.load %arg10[%c0_74, %c1_75, %c1_76, %c0_77] : memref<1x10x10x8xf32, #tpu.memory_space<vmem>>, vector<1x8x8x8xf32>
    tpu.vector_store %arg10[%c0_74, %c1_75, %c1_76, %c0_77], %81 {strides = array<i32>} : memref<1x10x10x8xf32, #tpu.memory_space<vmem>>, vector<1x8x8x8xf32>,
    %c0_78 = arith.constant 0 : index
    %c0_79 = arith.constant 0 : index
    %c0_80 = arith.constant 0 : index
    %c0_81 = arith.constant 0 : index
    %83 = vector.load %arg10[%c0_78, %c0_79, %c0_80, %c0_81] : memref<1x10x10x8xf32, #tpu.memory_space<vmem>>, vector<1x8x8x8xf32>
    %84 = vector.shape_cast %83 : vector<1x8x8x8xf32> to vector<64x8xf32>
    %85 = arith.truncf %84 : vector<64x8xf32> to vector<64x8xbf16>
    %86 = vector.extract_strided_slice %1 {offsets = [0, 0], sizes = [8, 8], strides = [1, 1]} : vector<72x8xbf16> to vector<8x8xbf16>
    %cst_82 = arith.constant dense<0.000000e+00> : vector<64x8xf32>
    %87 = tpu.matmul %85, %86, %cst_82 {dimension_numbers = #tpu.dot_dimension_numbers<[1], [0], [0], [1], [0, 0, 1, 1], [], []>} : vector<64x8xbf16>, vector<8x8xbf16>, vector<64x8xf32> -> vector<64x8xf32>
    %88 = arith.addf %3, %87 : vector<64x8xf32>
    %c0_83 = arith.constant 0 : index
    %c0_84 = arith.constant 0 : index
    %c1_85 = arith.constant 1 : index
    %c0_86 = arith.constant 0 : index
    %89 = vector.load %arg10[%c0_83, %c0_84, %c1_85, %c0_86] : memref<1x10x10x8xf32, #tpu.memory_space<vmem>>, vector<1x8x8x8xf32>
    %90 = vector.shape_cast %89 : vector<1x8x8x8xf32> to vector<64x8xf32>
    %91 = arith.truncf %90 : vector<64x8xf32> to vector<64x8xbf16>
    %92 = vector.extract_strided_slice %1 {offsets = [8, 0], sizes = [8, 8], strides = [1, 1]} : vector<72x8xbf16> to vector<8x8xbf16>
    %cst_87 = arith.constant dense<0.000000e+00> : vector<64x8xf32>
    %93 = tpu.matmul %91, %92, %cst_87 {dimension_numbers = #tpu.dot_dimension_numbers<[1], [0], [0], [1], [0, 0, 1, 1], [], []>} : vector<64x8xbf16>, vector<8x8xbf16>, vector<64x8xf32> -> vector<64x8xf32>
    %94 = arith.addf %88, %93 : vector<64x8xf32>
    %c0_88 = arith.constant 0 : index
    %c0_89 = arith.constant 0 : index
    %c2_90 = arith.constant 2 : index
    %c0_91 = arith.constant 0 : index
    %95 = vector.load %arg10[%c0_88, %c0_89, %c2_90, %c0_91] : memref<1x10x10x8xf32, #tpu.memory_space<vmem>>, vector<1x8x8x8xf32>
    %96 = vector.shape_cast %95 : vector<1x8x8x8xf32> to vector<64x8xf32>
    %97 = arith.truncf %96 : vector<64x8xf32> to vector<64x8xbf16>
    %98 = vector.extract_strided_slice %1 {offsets = [16, 0], sizes = [8, 8], strides = [1, 1]} : vector<72x8xbf16> to vector<8x8xbf16>
    %cst_92 = arith.constant dense<0.000000e+00> : vector<64x8xf32>
    %99 = tpu.matmul %97, %98, %cst_92 {dimension_numbers = #tpu.dot_dimension_numbers<[1], [0], [0], [1], [0, 0, 1, 1], [], []>} : vector<64x8xbf16>, vector<8x8xbf16>, vector<64x8xf32> -> vector<64x8xf32>
    %100 = arith.addf %94, %99 : vector<64x8xf32>
    %c0_93 = arith.constant 0 : index
    %c1_94 = arith.constant 1 : index
    %c0_95 = arith.constant 0 : index
    %c0_96 = arith.constant 0 : index
    %101 = vector.load %arg10[%c0_93, %c1_94, %c0_95, %c0_96] : memref<1x10x10x8xf32, #tpu.memory_space<vmem>>, vector<1x8x8x8xf32>
    %102 = vector.shape_cast %101 : vector<1x8x8x8xf32> to vector<64x8xf32>
    %103 = arith.truncf %102 : vector<64x8xf32> to vector<64x8xbf16>
    %104 = vector.extract_strided_slice %1 {offsets = [24, 0], sizes = [8, 8], strides = [1, 1]} : vector<72x8xbf16> to vector<8x8xbf16>
    %cst_97 = arith.constant dense<0.000000e+00> : vector<64x8xf32>
    %105 = tpu.matmul %103, %104, %cst_97 {dimension_numbers = #tpu.dot_dimension_numbers<[1], [0], [0], [1], [0, 0, 1, 1], [], []>} : vector<64x8xbf16>, vector<8x8xbf16>, vector<64x8xf32> -> vector<64x8xf32>
    %106 = arith.addf %100, %105 : vector<64x8xf32>
    %c0_98 = arith.constant 0 : index
    %c1_99 = arith.constant 1 : index
    %c1_100 = arith.constant 1 : index
    %c0_101 = arith.constant 0 : index
    %107 = vector.load %arg10[%c0_98, %c1_99, %c1_100, %c0_101] : memref<1x10x10x8xf32, #tpu.memory_space<vmem>>, vector<1x8x8x8xf32>
    %108 = vector.shape_cast %107 : vector<1x8x8x8xf32> to vector<64x8xf32>
    %109 = arith.truncf %108 : vector<64x8xf32> to vector<64x8xbf16>
    %110 = vector.extract_strided_slice %1 {offsets = [32, 0], sizes = [8, 8], strides = [1, 1]} : vector<72x8xbf16> to vector<8x8xbf16>
    %cst_102 = arith.constant dense<0.000000e+00> : vector<64x8xf32>
    %111 = tpu.matmul %109, %110, %cst_102 {dimension_numbers = #tpu.dot_dimension_numbers<[1], [0], [0], [1], [0, 0, 1, 1], [], []>} : vector<64x8xbf16>, vector<8x8xbf16>, vector<64x8xf32> -> vector<64x8xf32>
    %112 = arith.addf %106, %111 : vector<64x8xf32>
    %c0_103 = arith.constant 0 : index
    %c1_104 = arith.constant 1 : index
    %c2_105 = arith.constant 2 : index
    %c0_106 = arith.constant 0 : index
    %113 = vector.load %arg10[%c0_103, %c1_104, %c2_105, %c0_106] : memref<1x10x10x8xf32, #tpu.memory_space<vmem>>, vector<1x8x8x8xf32>
    %114 = vector.shape_cast %113 : vector<1x8x8x8xf32> to vector<64x8xf32>
    %115 = arith.truncf %114 : vector<64x8xf32> to vector<64x8xbf16>
    %116 = vector.extract_strided_slice %1 {offsets = [40, 0], sizes = [8, 8], strides = [1, 1]} : vector<72x8xbf16> to vector<8x8xbf16>
    %cst_107 = arith.constant dense<0.000000e+00> : vector<64x8xf32>
    %117 = tpu.matmul %115, %116, %cst_107 {dimension_numbers = #tpu.dot_dimension_numbers<[1], [0], [0], [1], [0, 0, 1, 1], [], []>} : vector<64x8xbf16>, vector<8x8xbf16>, vector<64x8xf32> -> vector<64x8xf32>
    %118 = arith.addf %112, %117 : vector<64x8xf32>
    %c0_108 = arith.constant 0 : index
    %c2_109 = arith.constant 2 : index
    %c0_110 = arith.constant 0 : index
    %c0_111 = arith.constant 0 : index
    %119 = vector.load %arg10[%c0_108, %c2_109, %c0_110, %c0_111] : memref<1x10x10x8xf32, #tpu.memory_space<vmem>>, vector<1x8x8x8xf32>
    %120 = vector.shape_cast %119 : vector<1x8x8x8xf32> to vector<64x8xf32>
    %121 = arith.truncf %120 : vector<64x8xf32> to vector<64x8xbf16>
    %122 = vector.extract_strided_slice %1 {offsets = [48, 0], sizes = [8, 8], strides = [1, 1]} : vector<72x8xbf16> to vector<8x8xbf16>
    %cst_112 = arith.constant dense<0.000000e+00> : vector<64x8xf32>
    %123 = tpu.matmul %121, %122, %cst_112 {dimension_numbers = #tpu.dot_dimension_numbers<[1], [0], [0], [1], [0, 0, 1, 1], [], []>} : vector<64x8xbf16>, vector<8x8xbf16>, vector<64x8xf32> -> vector<64x8xf32>
    %124 = arith.addf %118, %123 : vector<64x8xf32>
    %c0_113 = arith.constant 0 : index
    %c2_114 = arith.constant 2 : index
    %c1_115 = arith.constant 1 : index
    %c0_116 = arith.constant 0 : index
    %125 = vector.load %arg10[%c0_113, %c2_114, %c1_115, %c0_116] : memref<1x10x10x8xf32, #tpu.memory_space<vmem>>, vector<1x8x8x8xf32>
    %126 = vector.shape_cast %125 : vector<1x8x8x8xf32> to vector<64x8xf32>
    %127 = arith.truncf %126 : vector<64x8xf32> to vector<64x8xbf16>
    %128 = vector.extract_strided_slice %1 {offsets = [56, 0], sizes = [8, 8], strides = [1, 1]} : vector<72x8xbf16> to vector<8x8xbf16>
    %cst_117 = arith.constant dense<0.000000e+00> : vector<64x8xf32>
    %129 = tpu.matmul %127, %128, %cst_117 {dimension_numbers = #tpu.dot_dimension_numbers<[1], [0], [0], [1], [0, 0, 1, 1], [], []>} : vector<64x8xbf16>, vector<8x8xbf16>, vector<64x8xf32> -> vector<64x8xf32>
    %130 = arith.addf %124, %129 : vector<64x8xf32>
    %c0_118 = arith.constant 0 : index
    %c2_119 = arith.constant 2 : index
    %c2_120 = arith.constant 2 : index
    %c0_121 = arith.constant 0 : index
    %131 = vector.load %arg10[%c0_118, %c2_119, %c2_120, %c0_121] : memref<1x10x10x8xf32, #tpu.memory_space<vmem>>, vector<1x8x8x8xf32>
    %132 = vector.shape_cast %131 : vector<1x8x8x8xf32> to vector<64x8xf32>
    %133 = arith.truncf %132 : vector<64x8xf32> to vector<64x8xbf16>
    %134 = vector.extract_strided_slice %1 {offsets = [64, 0], sizes = [8, 8], strides = [1, 1]} : vector<72x8xbf16> to vector<8x8xbf16>
    %cst_122 = arith.constant dense<0.000000e+00> : vector<64x8xf32>
    %135 = tpu.matmul %133, %134, %cst_122 {dimension_numbers = #tpu.dot_dimension_numbers<[1], [0], [0], [1], [0, 0, 1, 1], [], []>} : vector<64x8xbf16>, vector<8x8xbf16>, vector<64x8xf32> -> vector<64x8xf32>
    %136 = arith.addf %130, %135 : vector<64x8xf32>
    %137 = vector.shape_cast %136 : vector<64x8xf32> to vector<1x8x8x8xf32>
    %c0_123 = arith.constant 0 : index
    %c0_124 = arith.constant 0 : index
    %c0_125 = arith.constant 0 : index
    %c0_126 = arith.constant 0 : index
    %138 = vector.load %arg8[%c0_123, %c0_124, %c0_125, %c0_126] : memref<1x8x8x8xf32, #tpu.memory_space<vmem>>, vector<1x8x8x8xf32>
    tpu.vector_store %arg8[%c0_123, %c0_124, %c0_125, %c0_126], %137 {strides = array<i32>} : memref<1x8x8x8xf32, #tpu.memory_space<vmem>>, vector<1x8x8x8xf32>,
    return
  }
  func.func @transform_0(%arg0: i32) -> (i32, i32, i32, i32) {
    %c0_i32 = arith.constant 0 : i32
    %c0_i32_0 = arith.constant 0 : i32
    %c0_i32_1 = arith.constant 0 : i32
    %c0_i32_2 = arith.constant 0 : i32
    return %arg0, %c0_i32, %c0_i32_0, %c0_i32_1 : i32, i32, i32, i32
  }
  func.func @transform_1(%arg0: i32) -> (i32, i32) {
    %c0_i32 = arith.constant 0 : i32
    %c0_i32_0 = arith.constant 0 : i32
    %c0_i32_1 = arith.constant 0 : i32
    return %c0_i32, %c0_i32_0 : i32, i32
  }
  func.func @transform_2(%arg0: i32) -> (i32, i32) {
    %c0_i32 = arith.constant 0 : i32
    %c0_i32_0 = arith.constant 0 : i32
    %c0_i32_1 = arith.constant 0 : i32
    return %c0_i32, %c0_i32_0 : i32, i32
  }
  func.func @transform_3(%arg0: i32) -> (i32, i32) {
    %c0_i32 = arith.constant 0 : i32
    %c0_i32_0 = arith.constant 0 : i32
    %c0_i32_1 = arith.constant 0 : i32
    return %c0_i32, %c0_i32_0 : i32, i32
  }
  func.func @transform_4(%arg0: i32) -> (i32, i32) {
    %c0_i32 = arith.constant 0 : i32
    %c0_i32_0 = arith.constant 0 : i32
    %c0_i32_1 = arith.constant 0 : i32
    return %c0_i32, %c0_i32_0 : i32, i32
  }
  func.func @transform_5(%arg0: i32) -> (i32, i32) {
    %c0_i32 = arith.constant 0 : i32
    %c0_i32_0 = arith.constant 0 : i32
    %c0_i32_1 = arith.constant 0 : i32
    return %c0_i32, %c0_i32_0 : i32, i32
  }
  func.func @transform_6(%arg0: i32) -> (i32, i32) {
    %c0_i32 = arith.constant 0 : i32
    %c0_i32_0 = arith.constant 0 : i32
    %c0_i32_1 = arith.constant 0 : i32
    return %c0_i32, %c0_i32_0 : i32, i32
  }
  func.func @transform_7(%arg0: i32) -> (i32, i32, i32, i32) {
    %c0_i32 = arith.constant 0 : i32
    %c0_i32_0 = arith.constant 0 : i32
    %c0_i32_1 = arith.constant 0 : i32
    %c0_i32_2 = arith.constant 0 : i32
    return %arg0, %c0_i32, %c0_i32_0, %c0_i32_1 : i32, i32, i32, i32
  }
}

module attributes {stable_mosaic.version = 11 : i64} {
  func.func @_block_proj_kernel(%arg0: i32, %arg1: memref<64x36xbf16, #tpu.memory_space<vmem>>, %arg2: memref<36x16xbf16, #tpu.memory_space<vmem>>, %arg3: memref<72x8xbf16, #tpu.memory_space<vmem>>, %arg4: memref<1x8xf32, #tpu.memory_space<vmem>>, %arg5: memref<1x8xf32, #tpu.memory_space<vmem>>, %arg6: memref<1x8x8x8xf32, #tpu.memory_space<vmem>>, %arg7: memref<1x10x10x8xf32, #tpu.memory_space<vmem>>) attributes {dimension_semantics = [#tpu.dimension_semantics<parallel>], iteration_bounds = array<i64: 2>, scalar_prefetch = 0 : i64, scratch_operands = 1 : i64, tpu.core_type = #tpu.core_type<tc>, window_params = [{transform_indices = @transform_0, window_bounds = array<i64: 64, 36>}, {pipeline_mode = #tpu.pipeline_mode<synchronous>, transform_indices = @transform_1, window_bounds = array<i64: 36, 16>}, {pipeline_mode = #tpu.pipeline_mode<synchronous>, transform_indices = @transform_2, window_bounds = array<i64: 72, 8>}, {pipeline_mode = #tpu.pipeline_mode<synchronous>, transform_indices = @transform_3, window_bounds = array<i64: 1, 8>}, {pipeline_mode = #tpu.pipeline_mode<synchronous>, transform_indices = @transform_4, window_bounds = array<i64: 1, 8>}, {transform_indices = @transform_5, window_bounds = array<i64: 1, 8, 8, 8>}]} {
    %c0 = arith.constant 0 : index
    %c0_0 = arith.constant 0 : index
    %0 = vector.load %arg1[%c0, %c0_0] : memref<64x36xbf16, #tpu.memory_space<vmem>>, vector<64x36xbf16>
    %c0_1 = arith.constant 0 : index
    %c0_2 = arith.constant 0 : index
    %1 = vector.load %arg2[%c0_1, %c0_2] : memref<36x16xbf16, #tpu.memory_space<vmem>>, vector<36x16xbf16>
    %cst = arith.constant dense<0.000000e+00> : vector<64x16xf32>
    %2 = tpu.matmul %0, %1, %cst {dimension_numbers = #tpu.dot_dimension_numbers<[1], [0], [0], [1], [0, 0, 1, 1], [], []>} : vector<64x36xbf16>, vector<36x16xbf16>, vector<64x16xf32> -> vector<64x16xf32>
    %3 = vector.extract_strided_slice %2 {offsets = [0, 0], sizes = [64, 8], strides = [1, 1]} : vector<64x16xf32> to vector<64x8xf32>
    %4 = vector.extract_strided_slice %2 {offsets = [0, 8], sizes = [64, 8], strides = [1, 1]} : vector<64x16xf32> to vector<64x8xf32>
    %c0_3 = arith.constant 0 : index
    %c0_4 = arith.constant 0 : index
    %5 = vector.load %arg4[%c0_3, %c0_4] : memref<1x8xf32, #tpu.memory_space<vmem>>, vector<1x8xf32>
    %6 = vector.broadcast %5 : vector<1x8xf32> to vector<64x8xf32>
    %7 = arith.mulf %3, %6 : vector<64x8xf32>
    %c0_5 = arith.constant 0 : index
    %c0_6 = arith.constant 0 : index
    %8 = vector.load %arg5[%c0_5, %c0_6] : memref<1x8xf32, #tpu.memory_space<vmem>>, vector<1x8xf32>
    %9 = vector.broadcast %8 : vector<1x8xf32> to vector<64x8xf32>
    %10 = arith.addf %7, %9 : vector<64x8xf32>
    %cst_7 = arith.constant 0.000000e+00 : f32
    %11 = vector.broadcast %cst_7 : f32 to vector<64x8xf32>
    %12 = arith.maximumf %10, %11 : vector<64x8xf32>
    %cst_8 = arith.constant 0.000000e+00 : f32
    %13 = vector.broadcast %cst_8 : f32 to vector<1x10x10x8xf32>
    %c0_9 = arith.constant 0 : index
    %c0_10 = arith.constant 0 : index
    %c0_11 = arith.constant 0 : index
    %c0_12 = arith.constant 0 : index
    %14 = vector.load %arg7[%c0_9, %c0_10, %c0_11, %c0_12] : memref<1x10x10x8xf32, #tpu.memory_space<vmem>>, vector<1x10x10x8xf32>
    tpu.vector_store %arg7[%c0_9, %c0_10, %c0_11, %c0_12], %13 {strides = array<i32>} : memref<1x10x10x8xf32, #tpu.memory_space<vmem>>, vector<1x10x10x8xf32>,
    %15 = vector.shape_cast %12 : vector<64x8xf32> to vector<1x8x8x8xf32>
    %c0_13 = arith.constant 0 : index
    %c1 = arith.constant 1 : index
    %c1_14 = arith.constant 1 : index
    %c0_15 = arith.constant 0 : index
    %16 = vector.load %arg7[%c0_13, %c1, %c1_14, %c0_15] : memref<1x10x10x8xf32, #tpu.memory_space<vmem>>, vector<1x8x8x8xf32>
    tpu.vector_store %arg7[%c0_13, %c1, %c1_14, %c0_15], %15 {strides = array<i32>} : memref<1x10x10x8xf32, #tpu.memory_space<vmem>>, vector<1x8x8x8xf32>,
    %c0_16 = arith.constant 0 : index
    %c0_17 = arith.constant 0 : index
    %17 = vector.load %arg3[%c0_16, %c0_17] : memref<72x8xbf16, #tpu.memory_space<vmem>>, vector<72x8xbf16>
    %c0_18 = arith.constant 0 : index
    %c0_19 = arith.constant 0 : index
    %c0_20 = arith.constant 0 : index
    %c0_21 = arith.constant 0 : index
    %18 = vector.load %arg7[%c0_18, %c0_19, %c0_20, %c0_21] : memref<1x10x10x8xf32, #tpu.memory_space<vmem>>, vector<1x8x8x8xf32>
    %19 = vector.shape_cast %18 : vector<1x8x8x8xf32> to vector<64x8xf32>
    %20 = arith.truncf %19 : vector<64x8xf32> to vector<64x8xbf16>
    %21 = vector.extract_strided_slice %17 {offsets = [0, 0], sizes = [8, 8], strides = [1, 1]} : vector<72x8xbf16> to vector<8x8xbf16>
    %cst_22 = arith.constant dense<0.000000e+00> : vector<64x8xf32>
    %22 = tpu.matmul %20, %21, %cst_22 {dimension_numbers = #tpu.dot_dimension_numbers<[1], [0], [0], [1], [0, 0, 1, 1], [], []>} : vector<64x8xbf16>, vector<8x8xbf16>, vector<64x8xf32> -> vector<64x8xf32>
    %23 = arith.addf %4, %22 : vector<64x8xf32>
    %c0_23 = arith.constant 0 : index
    %c0_24 = arith.constant 0 : index
    %c1_25 = arith.constant 1 : index
    %c0_26 = arith.constant 0 : index
    %24 = vector.load %arg7[%c0_23, %c0_24, %c1_25, %c0_26] : memref<1x10x10x8xf32, #tpu.memory_space<vmem>>, vector<1x8x8x8xf32>
    %25 = vector.shape_cast %24 : vector<1x8x8x8xf32> to vector<64x8xf32>
    %26 = arith.truncf %25 : vector<64x8xf32> to vector<64x8xbf16>
    %27 = vector.extract_strided_slice %17 {offsets = [8, 0], sizes = [8, 8], strides = [1, 1]} : vector<72x8xbf16> to vector<8x8xbf16>
    %cst_27 = arith.constant dense<0.000000e+00> : vector<64x8xf32>
    %28 = tpu.matmul %26, %27, %cst_27 {dimension_numbers = #tpu.dot_dimension_numbers<[1], [0], [0], [1], [0, 0, 1, 1], [], []>} : vector<64x8xbf16>, vector<8x8xbf16>, vector<64x8xf32> -> vector<64x8xf32>
    %29 = arith.addf %23, %28 : vector<64x8xf32>
    %c0_28 = arith.constant 0 : index
    %c0_29 = arith.constant 0 : index
    %c2 = arith.constant 2 : index
    %c0_30 = arith.constant 0 : index
    %30 = vector.load %arg7[%c0_28, %c0_29, %c2, %c0_30] : memref<1x10x10x8xf32, #tpu.memory_space<vmem>>, vector<1x8x8x8xf32>
    %31 = vector.shape_cast %30 : vector<1x8x8x8xf32> to vector<64x8xf32>
    %32 = arith.truncf %31 : vector<64x8xf32> to vector<64x8xbf16>
    %33 = vector.extract_strided_slice %17 {offsets = [16, 0], sizes = [8, 8], strides = [1, 1]} : vector<72x8xbf16> to vector<8x8xbf16>
    %cst_31 = arith.constant dense<0.000000e+00> : vector<64x8xf32>
    %34 = tpu.matmul %32, %33, %cst_31 {dimension_numbers = #tpu.dot_dimension_numbers<[1], [0], [0], [1], [0, 0, 1, 1], [], []>} : vector<64x8xbf16>, vector<8x8xbf16>, vector<64x8xf32> -> vector<64x8xf32>
    %35 = arith.addf %29, %34 : vector<64x8xf32>
    %c0_32 = arith.constant 0 : index
    %c1_33 = arith.constant 1 : index
    %c0_34 = arith.constant 0 : index
    %c0_35 = arith.constant 0 : index
    %36 = vector.load %arg7[%c0_32, %c1_33, %c0_34, %c0_35] : memref<1x10x10x8xf32, #tpu.memory_space<vmem>>, vector<1x8x8x8xf32>
    %37 = vector.shape_cast %36 : vector<1x8x8x8xf32> to vector<64x8xf32>
    %38 = arith.truncf %37 : vector<64x8xf32> to vector<64x8xbf16>
    %39 = vector.extract_strided_slice %17 {offsets = [24, 0], sizes = [8, 8], strides = [1, 1]} : vector<72x8xbf16> to vector<8x8xbf16>
    %cst_36 = arith.constant dense<0.000000e+00> : vector<64x8xf32>
    %40 = tpu.matmul %38, %39, %cst_36 {dimension_numbers = #tpu.dot_dimension_numbers<[1], [0], [0], [1], [0, 0, 1, 1], [], []>} : vector<64x8xbf16>, vector<8x8xbf16>, vector<64x8xf32> -> vector<64x8xf32>
    %41 = arith.addf %35, %40 : vector<64x8xf32>
    %c0_37 = arith.constant 0 : index
    %c1_38 = arith.constant 1 : index
    %c1_39 = arith.constant 1 : index
    %c0_40 = arith.constant 0 : index
    %42 = vector.load %arg7[%c0_37, %c1_38, %c1_39, %c0_40] : memref<1x10x10x8xf32, #tpu.memory_space<vmem>>, vector<1x8x8x8xf32>
    %43 = vector.shape_cast %42 : vector<1x8x8x8xf32> to vector<64x8xf32>
    %44 = arith.truncf %43 : vector<64x8xf32> to vector<64x8xbf16>
    %45 = vector.extract_strided_slice %17 {offsets = [32, 0], sizes = [8, 8], strides = [1, 1]} : vector<72x8xbf16> to vector<8x8xbf16>
    %cst_41 = arith.constant dense<0.000000e+00> : vector<64x8xf32>
    %46 = tpu.matmul %44, %45, %cst_41 {dimension_numbers = #tpu.dot_dimension_numbers<[1], [0], [0], [1], [0, 0, 1, 1], [], []>} : vector<64x8xbf16>, vector<8x8xbf16>, vector<64x8xf32> -> vector<64x8xf32>
    %47 = arith.addf %41, %46 : vector<64x8xf32>
    %c0_42 = arith.constant 0 : index
    %c1_43 = arith.constant 1 : index
    %c2_44 = arith.constant 2 : index
    %c0_45 = arith.constant 0 : index
    %48 = vector.load %arg7[%c0_42, %c1_43, %c2_44, %c0_45] : memref<1x10x10x8xf32, #tpu.memory_space<vmem>>, vector<1x8x8x8xf32>
    %49 = vector.shape_cast %48 : vector<1x8x8x8xf32> to vector<64x8xf32>
    %50 = arith.truncf %49 : vector<64x8xf32> to vector<64x8xbf16>
    %51 = vector.extract_strided_slice %17 {offsets = [40, 0], sizes = [8, 8], strides = [1, 1]} : vector<72x8xbf16> to vector<8x8xbf16>
    %cst_46 = arith.constant dense<0.000000e+00> : vector<64x8xf32>
    %52 = tpu.matmul %50, %51, %cst_46 {dimension_numbers = #tpu.dot_dimension_numbers<[1], [0], [0], [1], [0, 0, 1, 1], [], []>} : vector<64x8xbf16>, vector<8x8xbf16>, vector<64x8xf32> -> vector<64x8xf32>
    %53 = arith.addf %47, %52 : vector<64x8xf32>
    %c0_47 = arith.constant 0 : index
    %c2_48 = arith.constant 2 : index
    %c0_49 = arith.constant 0 : index
    %c0_50 = arith.constant 0 : index
    %54 = vector.load %arg7[%c0_47, %c2_48, %c0_49, %c0_50] : memref<1x10x10x8xf32, #tpu.memory_space<vmem>>, vector<1x8x8x8xf32>
    %55 = vector.shape_cast %54 : vector<1x8x8x8xf32> to vector<64x8xf32>
    %56 = arith.truncf %55 : vector<64x8xf32> to vector<64x8xbf16>
    %57 = vector.extract_strided_slice %17 {offsets = [48, 0], sizes = [8, 8], strides = [1, 1]} : vector<72x8xbf16> to vector<8x8xbf16>
    %cst_51 = arith.constant dense<0.000000e+00> : vector<64x8xf32>
    %58 = tpu.matmul %56, %57, %cst_51 {dimension_numbers = #tpu.dot_dimension_numbers<[1], [0], [0], [1], [0, 0, 1, 1], [], []>} : vector<64x8xbf16>, vector<8x8xbf16>, vector<64x8xf32> -> vector<64x8xf32>
    %59 = arith.addf %53, %58 : vector<64x8xf32>
    %c0_52 = arith.constant 0 : index
    %c2_53 = arith.constant 2 : index
    %c1_54 = arith.constant 1 : index
    %c0_55 = arith.constant 0 : index
    %60 = vector.load %arg7[%c0_52, %c2_53, %c1_54, %c0_55] : memref<1x10x10x8xf32, #tpu.memory_space<vmem>>, vector<1x8x8x8xf32>
    %61 = vector.shape_cast %60 : vector<1x8x8x8xf32> to vector<64x8xf32>
    %62 = arith.truncf %61 : vector<64x8xf32> to vector<64x8xbf16>
    %63 = vector.extract_strided_slice %17 {offsets = [56, 0], sizes = [8, 8], strides = [1, 1]} : vector<72x8xbf16> to vector<8x8xbf16>
    %cst_56 = arith.constant dense<0.000000e+00> : vector<64x8xf32>
    %64 = tpu.matmul %62, %63, %cst_56 {dimension_numbers = #tpu.dot_dimension_numbers<[1], [0], [0], [1], [0, 0, 1, 1], [], []>} : vector<64x8xbf16>, vector<8x8xbf16>, vector<64x8xf32> -> vector<64x8xf32>
    %65 = arith.addf %59, %64 : vector<64x8xf32>
    %c0_57 = arith.constant 0 : index
    %c2_58 = arith.constant 2 : index
    %c2_59 = arith.constant 2 : index
    %c0_60 = arith.constant 0 : index
    %66 = vector.load %arg7[%c0_57, %c2_58, %c2_59, %c0_60] : memref<1x10x10x8xf32, #tpu.memory_space<vmem>>, vector<1x8x8x8xf32>
    %67 = vector.shape_cast %66 : vector<1x8x8x8xf32> to vector<64x8xf32>
    %68 = arith.truncf %67 : vector<64x8xf32> to vector<64x8xbf16>
    %69 = vector.extract_strided_slice %17 {offsets = [64, 0], sizes = [8, 8], strides = [1, 1]} : vector<72x8xbf16> to vector<8x8xbf16>
    %cst_61 = arith.constant dense<0.000000e+00> : vector<64x8xf32>
    %70 = tpu.matmul %68, %69, %cst_61 {dimension_numbers = #tpu.dot_dimension_numbers<[1], [0], [0], [1], [0, 0, 1, 1], [], []>} : vector<64x8xbf16>, vector<8x8xbf16>, vector<64x8xf32> -> vector<64x8xf32>
    %71 = arith.addf %65, %70 : vector<64x8xf32>
    %72 = vector.shape_cast %71 : vector<64x8xf32> to vector<1x8x8x8xf32>
    %c0_62 = arith.constant 0 : index
    %c0_63 = arith.constant 0 : index
    %c0_64 = arith.constant 0 : index
    %c0_65 = arith.constant 0 : index
    %73 = vector.load %arg6[%c0_62, %c0_63, %c0_64, %c0_65] : memref<1x8x8x8xf32, #tpu.memory_space<vmem>>, vector<1x8x8x8xf32>
    tpu.vector_store %arg6[%c0_62, %c0_63, %c0_64, %c0_65], %72 {strides = array<i32>} : memref<1x8x8x8xf32, #tpu.memory_space<vmem>>, vector<1x8x8x8xf32>,
    return
  }
  func.func @transform_0(%arg0: i32) -> (i32, i32) {
    %c0_i32 = arith.constant 0 : i32
    %c0_i32_0 = arith.constant 0 : i32
    return %arg0, %c0_i32 : i32, i32
  }
  func.func @transform_1(%arg0: i32) -> (i32, i32) {
    %c0_i32 = arith.constant 0 : i32
    %c0_i32_0 = arith.constant 0 : i32
    %c0_i32_1 = arith.constant 0 : i32
    return %c0_i32, %c0_i32_0 : i32, i32
  }
  func.func @transform_2(%arg0: i32) -> (i32, i32) {
    %c0_i32 = arith.constant 0 : i32
    %c0_i32_0 = arith.constant 0 : i32
    %c0_i32_1 = arith.constant 0 : i32
    return %c0_i32, %c0_i32_0 : i32, i32
  }
  func.func @transform_3(%arg0: i32) -> (i32, i32) {
    %c0_i32 = arith.constant 0 : i32
    %c0_i32_0 = arith.constant 0 : i32
    %c0_i32_1 = arith.constant 0 : i32
    return %c0_i32, %c0_i32_0 : i32, i32
  }
  func.func @transform_4(%arg0: i32) -> (i32, i32) {
    %c0_i32 = arith.constant 0 : i32
    %c0_i32_0 = arith.constant 0 : i32
    %c0_i32_1 = arith.constant 0 : i32
    return %c0_i32, %c0_i32_0 : i32, i32
  }
  func.func @transform_5(%arg0: i32) -> (i32, i32, i32, i32) {
    %c0_i32 = arith.constant 0 : i32
    %c0_i32_0 = arith.constant 0 : i32
    %c0_i32_1 = arith.constant 0 : i32
    %c0_i32_2 = arith.constant 0 : i32
    return %arg0, %c0_i32, %c0_i32_0, %c0_i32_1 : i32, i32, i32, i32
  }
}

</mosaic_0001>

<bundles_post_ra>
// kernel: network_block.2
= control target key start
LH: loop header
LB: loop body
LE: loop exit
PB: predicated region body
PF: predicated region fallthrough
CT: control target
= control target key end

     0   :  { %s2007_s18 = smov 0   ;;  %s2333_s0 = inlined_call_operand.vmem [shape: bf16[128,36], index: 0, kind: input, shape index: {}]   ;;  %s2334_s1 = inlined_call_operand.vmem [shape: bf16[36,16], index: 1, kind: input, shape index: {}]   ;;  %s2335_s2 = inlined_call_operand.vmem [shape: bf16[72,8], index: 2, kind: input, shape index: {}]   ;;  %s2336_s3 = inlined_call_operand.vmem [shape: f32[1,8], index: 3, kind: input, shape index: {}]   ;;  %s2337_s4 = inlined_call_operand.vmem [shape: f32[1,8], index: 4, kind: input, shape index: {}]   ;;  %s2338_s5 = inlined_call_operand.vmem [shape: f32[2,8,8,8], index: 5, kind: output, shape index: {}]  }
   0x1 LB: > { %s2013_s19 = sadd.s32 4294967295, %s1972_s18   ;;  %p1725_p0 = scmp.ge.s32.totalorder %s1972_s18, 1  ;;  %s1972_s18 = sphi %s2007_s18, %s15_s18  }
   0x2   : > { %p188_p1 = scmp.lt.s32.totalorder %s1972_s18, 3 }
   0x4   : > { %p189_p2 = pnand %p1725_p0, %p188_p1 }
   0x5   : > { %s1726_s24 = sshll.u32 (!%p189_p2), %s2013_s19, 3  ;;  %s1976_s6 = smov (!%p189_p2), 120  }
   0x6   : > { %192 = sbr.rel (%p189_p2) target bundleno = 808 (0x328), region = 40  ;;  %p217_p3 = scmp.lt.s32.totalorder (!%p189_p2), %s1726_s24, 15 }
   0x7   : > { %p222_p4 = scmp.lt.s32.totalorder (!%p189_p2), %s2013_s19, 1 }
   0xb   : > { %v1959_v0 = vld [vmem:[%s2334_s1 + $0x10] ss:$0 sps:$4 sm:$0x33]   ;;  %vm289_vm0 = vcmask 1041408   ;;  %v1960_v1 = vld [vmem:[%s2334_s1 + $0x8] sm:$0xff]   ;;  %v1961_v3 = vld [vmem:[%s2334_s1] sm:$0xff]  }
   0xc   : > { %1938 = vmatprep.subr.msk.bf16.mxu0 %vm289_vm0, %v1959_v0  ;;  %v291_v2 = vsel %vm289_vm0, %v1959_v0, 0  ;;  %s2340_s24 = smov (!%p217_p3, %s1726_s24), 15  ;;  %vm276_vm1 = vcmask 293888   ;;  %vm396_vm2 = vcmask 64512   ;;  %vm398_vm3 = vcmask 58368   ;;  %s2342_s19 = smov (!%p222_p4, %s2013_s19), 1 }
   0xd   : > { %1835 = vmatpush3.bf16.msra.mxu0 %v291_v2  ;;  %s1727_s27 = sshll.u32 %s2340_s24, 2  ;;  %v1974_v8 = vmov 0.0   ;;  %v429_v9 = vld [vmem:[%s2335_s2 + $0x8] sm:$0xf]  ;;  %vm460_vm4 = vcmask 1043456   ;;  %s1781_s7 = sshll.u32 %s2342_s19, 6 }
   0xe   : > { %1836 = vmatprep.subr.bf16.mxu0 %v1960_v1  ;;  %s220_s30 = scalar_lea.vmem %s2333_s0, %s1727_s27  ;;  %404 = vst.msk [vmem:[#allocation2 + $0x30] sm:$0xff] %vm396_vm2, %v1974_v8  ;;  %397 = vst.msk [vmem:[#allocation2] sm:$0xff] %vm396_vm2, %v1974_v8  ;;  %v726_v10 = vsel %vm460_vm4, %v429_v9, 0  ;;  %v427_v11 = vld [vmem:[%s2335_s2] sm:$0xf]  ;;  %s226_s10 = scalar_lea.vmem %s2338_s5, %s1781_s7 }
   0xf   : > { %v1962_v4 = vld [vmem:[%s220_s30] sm:$0xff]   ;;  %v1963_v5 = vld [vmem:[%s220_s30 + $0x8] sm:$0xff]   ;;  %v1964_v6 = vld [vmem:[%s220_s30 + $0x10] sm:$0xff]   ;;  %405 = vst.msk [vmem:[#allocation2 + $0x38] sm:$0x3] %vm398_vm3, %v1974_v8  ;;  %1939 = vmatprep.subr.msk.bf16.mxu1 %vm460_vm4, %v427_v11  ;;  %v462_v12 = vsel %vm460_vm4, %v427_v11, 0 }
  0x10   : > { %1840 = vmatprep.mubr.msk.bf16.mxu0 %vm276_vm1, %v1962_v4  ;;  %v1965_v7 = vld [vmem:[%s220_s30 + $0x18] sm:$0xff]   ;;  %399 = vst.msk [vmem:[#allocation2 + $0x8] sm:$0x3] %vm398_vm3, %v1974_v8  ;;  %401 = vst.msk [vmem:[#allocation2 + $0x18] sm:$0x3] %vm398_vm3, %v1974_v8  ;;  %1849 = vmatpush3.bf16.msra.mxu1 %v462_v12  ;;  %s1975_s30 = smov 8  }
  0x11   : > { %1837 = vmatpush3.bf16.msra.mxu0 %v1960_v1  ;;  %400 = vst.msk [vmem:[#allocation2 + $0x10] sm:$0xff] %vm396_vm2, %v1974_v8  ;;  %402 = vst.msk [vmem:[#allocation2 + $0x20] sm:$0xff] %vm396_vm2, %v1974_v8  ;;  %v428_v13 = vld [vmem:[%s2335_s2 + $0x4] sm:$0xf]  ;;  %v431_v14 = vld [vmem:[%s2335_s2 + $0x10] sm:$0xf] }
  0x12   : > { %1838 = vmatprep.subr.bf16.mxu0 %v1961_v3  ;;  %403 = vst.msk [vmem:[#allocation2 + $0x28] sm:$0x3] %vm398_vm3, %v1974_v8  ;;  %407 = vst.msk [vmem:[#allocation2 + $0x48] sm:$0x3] %vm398_vm3, %v1974_v8  ;;  %1940 = vmatprep.subr.msk.bf16.mxu1 %vm460_vm4, %v428_v13  ;;  %v1741_v15 = vld [vmem:[%s2336_s3] ss:$0 sm:$0xff] }
  0x13   : > { %406 = vst.msk [vmem:[#allocation2 + $0x40] sm:$0xff] %vm396_vm2, %v1974_v8  ;;  %408 = vst.msk [vmem:[#allocation2 + $0x50] sm:$0xff] %vm396_vm2, %v1974_v8  ;;  %v1742_v17 = vld [vmem:[%s2337_s4] ss:$0 sm:$0xff]  ;;  %v594_v61 = vsel %vm460_vm4, %v428_v13, 0  ;;  %v990_v62 = vsel %vm460_vm4, %v431_v14, 0 }
  0x14   : > { %409 = vst.msk [vmem:[#allocation2 + $0x58] sm:$0x3] %vm398_vm3, %v1974_v8  ;;  %411 = vst.msk [vmem:[#allocation2 + $0x68] sm:$0x3] %vm398_vm3, %v1974_v8  ;;  %v430_v63 = vld [vmem:[%s2335_s2 + $0xc] sm:$0xf] }
  0x15   : > { %1839 = vmatpush3.bf16.msra.mxu0 %v1961_v3  ;;  %410 = vst.msk [vmem:[#allocation2 + $0x60] sm:$0xff] %vm396_vm2, %v1974_v8  ;;  %412 = vst.msk [vmem:[#allocation2 + $0x70] sm:$0xff] %vm396_vm2, %v1974_v8  ;;  %v436_v43 = vld [vmem:[#allocation2] sm:$0xff]  ;;  %v433_v0 = vld [vmem:[%s2335_s2 + $0x18] sm:$0xf] }
  0x16   : > { %413 = vst.msk [vmem:[#allocation2 + $0x78] sm:$0x3] %vm398_vm3, %v1974_v8  ;;  %415 = vst.msk [vmem:[#allocation2 + $0x88] sm:$0x3] %vm398_vm3, %v1974_v8  ;;  %1941 = vmatprep.subr.msk.bf16.mxu0 %vm460_vm4, %v429_v9 }
  0x17   : > { %414 = vst.msk [vmem:[#allocation2 + $0x80] sm:$0xff] %vm396_vm2, %v1974_v8  ;;  %416 = vst.msk [vmem:[#allocation2 + $0x90] sm:$0xff] %vm396_vm2, %v1974_v8  ;;  %v701_v44 = vld [vmem:[#allocation2 + $0x2] sm:$0xff] }
  0x18   : > { %1841 = vmatmul.mubr.msk.bf16.vlgmr.msra.gmra.mxu0 %vm276_vm1, %v1963_v5  ;;  %417 = vst.msk [vmem:[#allocation2 + $0x98] sm:$0x3] %vm398_vm3, %v1974_v8 }
  0x19   : > { %1844 = vmatprep.mubr.msk.bf16.mxu0 %vm276_vm1, %v1964_v6  ;;  %1869 = vmatpush3.bf16.msra.mxu0 %v726_v10 }
  0x1a   : > { %1943 = vmatprep.subr.msk.bf16.mxu0 %vm460_vm4, %v431_v14 }
  0x20   : > { %1845 = vmatmul.mubr.msk.bf16.gmra.mxu0 %vm276_vm1, %v1965_v7  ;;  %v569_v7 = vld [vmem:[#allocation2 + $0x1] sm:$0xff] }
  0xd8   : > { %v2071_v16 = vpop.f32.mrf.mxu0 }
  0xd9   : > { %v367_v18 = vmul.f32 %v2071_v16, %v1741_v15 }
  0xda   : > { %v2077_v19 = vpop.f32.mrf.mxu0 }
  0xdb   : > { %v382_v20 = vadd.f32 %v1742_v17, %v367_v18  ;;  %v365_v21 = vmul.f32 %v1741_v15, %v2077_v19 }
  0xdc   : > { %v2080_v22 = vpop.f32.mrf.mxu0 }
  0xdd   : > { %v390_v23 = vmax.f32 %v382_v20, 0.0  ;;  %v380_v24 = vadd.f32 %v1742_v17, %v365_v21  ;;  %v368_v25 = vmul.f32 %v2080_v22, %v1741_v15 }
  0xde   : > { %v2083_v26 = vpop.f32.mrf.mxu0 }
  0xdf   : > { %421 = vst.msk [vmem:[#allocation2 + $0x31] sm:$0xff] %vm396_vm2, %v390_v23  ;;  %v388_v27 = vmax.f32 %v380_v24, 0.0  ;;  %v383_v28 = vadd.f32 %v1742_v17, %v368_v25  ;;  %v366_v29 = vmul.f32 %v1741_v15, %v2083_v26 }
  0xe0   : > { %v2087_v30 = vpop.f32.mrf.mxu0 }
  0xe1   : > { %419 = vst.msk [vmem:[#allocation2 + $0x11] sm:$0xff] %vm396_vm2, %v388_v27  ;;  %v391_v31 = vmax.f32 %v383_v28, 0.0  ;;  %v381_v32 = vadd.f32 %v1742_v17, %v366_v29  ;;  %v371_v33 = vmul.f32 %v2087_v30, %v1741_v15 }
  0xe2   : > { %v2091_v34 = vpop.f32.mrf.mxu0 }
  0xe3   : > { %422 = vst.msk [vmem:[#allocation2 + $0x41] sm:$0xff] %vm396_vm2, %v391_v31  ;;  %v389_v35 = vmax.f32 %v381_v32, 0.0  ;;  %v386_v36 = vadd.f32 %v1742_v17, %v371_v33  ;;  %v369_v37 = vmul.f32 %v1741_v15, %v2091_v34  ;;  %v858_v31 = vsel %vm460_vm4, %v430_v63, 0  ;;  %v432_v33 = vld [vmem:[%s2335_s2 + $0x14] sm:$0xf] }
  0xe4   : > { %v2095_v38 = vpop.f32.mrf.mxu0  ;;  %v1255_v32 = vsel %vm460_vm4, %v433_v0, 0 }
  0xe5   : > { %420 = vst.msk [vmem:[#allocation2 + $0x21] sm:$0xff] %vm396_vm2, %v389_v35  ;;  %v394_v39 = vmax.f32 %v386_v36, 0.0  ;;  %v384_v40 = vadd.f32 %v1742_v17, %v369_v37  ;;  %v372_v41 = vmul.f32 %v2095_v38, %v1741_v15  ;;  %v435_v35 = vld [vmem:[%s2335_s2 + $0x20] sm:$0xf] }
  0xe6   : > { %v2099_v42 = vpop.f32.mrf.mxu0  ;;  %v2113_v55 = vld [vmem:[#allocation2 + $0x30] sm:$0xff] }
  0xe7   : > { %425 = vst.msk [vmem:[#allocation2 + $0x71] sm:$0xff] %vm396_vm2, %v394_v39  ;;  %v392_v45 = vmax.f32 %v384_v40, 0.0  ;;  %v387_v46 = vadd.f32 %v1742_v17, %v372_v41  ;;  %v370_v47 = vmul.f32 %v1741_v15, %v2099_v42  ;;  %v2119_v58 = vld [vmem:[#allocation2 + $0x32] sm:$0xff] }
  0xe8   : > { %v2103_v48 = vld [vmem:[#allocation2 + $0x10] sm:$0xff] }
  0xe9   : > { %v2105_v49 = vld [vmem:[#allocation2 + $0x12] sm:$0xff]  ;;  %423 = vst.msk [vmem:[#allocation2 + $0x51] sm:$0xff] %vm396_vm2, %v392_v45  ;;  %v395_v50 = vmax.f32 %v387_v46, 0.0  ;;  %v385_v51 = vadd.f32 %v1742_v17, %v370_v47  ;;  %v444_v52 = vpack.c.bf16 %v2103_v48, %v436_v43  ;;  %v1122_v45 = vsel %vm460_vm4, %v432_v33, 0  ;;  %v434_v47 = vld [vmem:[%s2335_s2 + $0x1c] sm:$0xf] }
  0xea   : > { %v709_v53 = vpack.c.bf16 %v2105_v49, %v701_v44  ;;  %v440_v1 = vld [vmem:[#allocation2 + $0x40] sm:$0xff]  ;;  %v570_v9 = vld [vmem:[#allocation2 + $0x11] sm:$0xff]  ;;  %v1519_v46 = vsel %vm460_vm4, %v435_v35, 0 }
  0xeb   : > { %426 = vst.msk [vmem:[#allocation2 + $0x81] sm:$0xff] %vm396_vm2, %v395_v50  ;;  %v393_v54 = vmax.f32 %v385_v51, 0.0  ;;  %1850 = vmatprep.mubr.msk.bf16.mxu1 %vm396_vm2, %v444_v52  ;;  %v2144_v3 = vld [vmem:[#allocation2 + $0x42] sm:$0xff]  ;;  %v577_v17 = vpack.c.bf16 %v570_v9, %v569_v7  ;;  %v572_v24 = vld [vmem:[#allocation2 + $0x31] sm:$0xff]  ;;  %v842_v43 = vpack.c.bf16 %v440_v1, %v2113_v55 }
  0xec   : > { %1870 = vmatprep.mubr.msk.bf16.mxu0 %vm396_vm2, %v709_v53  ;;  %v2115_v56 = vld [vmem:[#allocation2 + $0x20] sm:$0xff]  ;;  %v1237_v50 = vld [vmem:[#allocation2 + $0x90] sm:$0xff] }
  0xed   : > { %v2117_v57 = vld [vmem:[#allocation2 + $0x22] sm:$0xff]  ;;  %424 = vst.msk [vmem:[#allocation2 + $0x61] sm:$0xff] %vm396_vm2, %v393_v54  ;;  %v2124_v59 = vpack.c.bf16 %v2113_v55, %v2115_v56  ;;  %v841_v41 = vpack.c.bf16 %v2115_v56, %v2103_v48  ;;  %v1106_v54 = vpack.c.bf16 %v2144_v3, %v2119_v58  ;;  %v1387_v56 = vsel %vm460_vm4, %v434_v47, 0 }
  0xee   : > { %v2128_v60 = vpack.c.bf16 %v2119_v58, %v2117_v57  ;;  %v443_v8 = vld [vmem:[#allocation2 + $0x70] sm:$0xff]  ;;  %v966_v10 = vld [vmem:[#allocation2 + $0x21] sm:$0xff]  ;;  %v1105_v53 = vpack.c.bf16 %v2117_v57, %v2105_v49 }
  0xef   : > { %1851 = vmatmul.mubr.msk.bf16.vlgmr.msra.gmra.mxu1 %vm396_vm2, %v2124_v59  ;;  %v2160_v13 = vld [vmem:[#allocation2 + $0x72] sm:$0xff]  ;;  %v973_v18 = vpack.c.bf16 %v966_v10, %v570_v9  ;;  %v968_v20 = vld [vmem:[#allocation2 + $0x41] sm:$0xff]  ;;  %v578_v25 = vpack.c.bf16 %v572_v24, %v966_v10 }
  0xf0   : > { %1871 = vmatmul.mubr.msk.bf16.vlgmr.msra.gmra.mxu0 %vm396_vm2, %v2128_v60  ;;  %v2142_v2 = vld [vmem:[#allocation2 + $0x50] sm:$0xff]  ;;  %1859 = vmatpush3.bf16.msra.mxu1 %v594_v61  ;;  %v974_v27 = vpack.c.bf16 %v968_v20, %v572_v24 }
  0xf1   : > { %v2146_v4 = vld [vmem:[#allocation2 + $0x52] sm:$0xff]  ;;  %1889 = vmatpush3.bf16.msra.mxu0 %v990_v62  ;;  %v446_v5 = vpack.c.bf16 %v2142_v2, %v440_v1  ;;  %1942 = vmatprep.subr.msk.bf16.mxu1 %vm460_vm4, %v430_v63 }
  0xf2   : > { %v2151_v6 = vpack.c.bf16 %v2146_v4, %v2144_v3  ;;  %1945 = vmatprep.subr.msk.bf16.mxu0 %vm460_vm4, %v433_v0  ;;  %v574_v21 = vld [vmem:[#allocation2 + $0x51] sm:$0xff]  ;;  %v972_v37 = vld [vmem:[#allocation2 + $0x81] sm:$0xff] }
  0xf3   : > { %1854 = vmatprep.mubr.msk.bf16.mxu1 %vm396_vm2, %v446_v5  ;;  %v579_v28 = vpack.c.bf16 %v574_v21, %v968_v20  ;;  %v576_v36 = vld [vmem:[#allocation2 + $0x71] sm:$0xff]  ;;  %v840_v48 = vld [vmem:[#allocation2 + $0x80] sm:$0xff] }
  0xf4   : > { %1874 = vmatprep.mubr.msk.bf16.mxu0 %vm396_vm2, %v2151_v6  ;;  %v442_v11 = vld [vmem:[#allocation2 + $0x60] sm:$0xff]  ;;  %v976_v40 = vpack.c.bf16 %v972_v37, %v576_v36  ;;  %v844_v51 = vpack.c.bf16 %v840_v48, %v443_v8  ;;  %v1241_v52 = vpack.c.bf16 %v1237_v50, %v840_v48  ;;  %v1501_v57 = vld [vmem:[#allocation2 + $0x92] sm:$0xff] }
  0xf5   : > { %v2158_v12 = vld [vmem:[#allocation2 + $0x62] sm:$0xff]  ;;  %v447_v14 = vpack.c.bf16 %v443_v8, %v442_v11  ;;  %v843_v44 = vpack.c.bf16 %v442_v11, %v2142_v2 }
  0xf6   : > { %v2164_v15 = vpack.c.bf16 %v2160_v13, %v2158_v12  ;;  %v970_v23 = vld [vmem:[#allocation2 + $0x61] sm:$0xff]  ;;  %v1107_v55 = vpack.c.bf16 %v2158_v12, %v2146_v4 }
  0xf7   : > { %1855 = vmatmul.mubr.msk.bf16.gmra.mxu1 %vm396_vm2, %v447_v14  ;;  %v975_v29 = vpack.c.bf16 %v970_v23, %v574_v21  ;;  %v580_v39 = vpack.c.bf16 %v576_v36, %v970_v23  ;;  %v1104_v49 = vld [vmem:[#allocation2 + $0x82] sm:$0xff] }
  0xf8   : > { %1875 = vmatmul.mubr.msk.bf16.gmra.mxu0 %vm396_vm2, %v2164_v15  ;;  %1860 = vmatprep.mubr.msk.bf16.mxu1 %vm396_vm2, %v577_v17  ;;  %v1108_v58 = vpack.c.bf16 %v1104_v49, %v2160_v13 }
  0xf9   : > { %1890 = vmatprep.mubr.msk.bf16.mxu0 %vm396_vm2, %v973_v18 }
  0xff   : > { %1861 = vmatmul.mubr.msk.bf16.vlgmr.msra.gmra.mxu1 %vm396_vm2, %v578_v25 }
 0x100   : > { %1891 = vmatmul.mubr.msk.bf16.vlgmr.msra.gmra.mxu0 %vm396_vm2, %v974_v27  ;;  %1864 = vmatprep.mubr.msk.bf16.mxu1 %vm396_vm2, %v579_v28 }
 0x101   : > { %1894 = vmatprep.mubr.msk.bf16.mxu0 %vm396_vm2, %v975_v29  ;;  %1879 = vmatpush3.bf16.msra.mxu1 %v858_v31 }
 0x102   : > { %1909 = vmatpush3.bf16.msra.mxu0 %v1255_v32  ;;  %1944 = vmatprep.subr.msk.bf16.mxu1 %vm460_vm4, %v432_v33 }
 0x103   : > { %1947 = vmatprep.subr.msk.bf16.mxu0 %vm460_vm4, %v435_v35 }
 0x107   : > { %1865 = vmatmul.mubr.msk.bf16.gmra.mxu1 %vm396_vm2, %v580_v39 }
 0x108   : > { %1895 = vmatmul.mubr.msk.bf16.gmra.mxu0 %vm396_vm2, %v976_v40  ;;  %1880 = vmatprep.mubr.msk.bf16.mxu1 %vm396_vm2, %v841_v41 }
 0x109   : > { %1910 = vmatprep.mubr.msk.bf16.mxu0 %vm396_vm2, %v2124_v59  ;;  %v1505_v59 = vpack.c.bf16 %v1501_v57, %v1104_v49 }
 0x10f   : > { %1881 = vmatmul.mubr.msk.bf16.vlgmr.msra.gmra.mxu1 %vm396_vm2, %v842_v43 }
 0x110   : > { %1911 = vmatmul.mubr.msk.bf16.vlgmr.msra.gmra.mxu0 %vm396_vm2, %v446_v5  ;;  %1884 = vmatprep.mubr.msk.bf16.mxu1 %vm396_vm2, %v843_v44 }
 0x111   : > { %1914 = vmatprep.mubr.msk.bf16.mxu0 %vm396_vm2, %v447_v14  ;;  %1899 = vmatpush3.bf16.msra.mxu1 %v1122_v45 }
 0x112   : > { %1929 = vmatpush3.bf16.msra.mxu0 %v1519_v46  ;;  %1946 = vmatprep.subr.msk.bf16.mxu1 %vm460_vm4, %v434_v47 }
 0x117   : > { %1885 = vmatmul.mubr.msk.bf16.gmra.mxu1 %vm396_vm2, %v844_v51 }
 0x118   : > { %1915 = vmatmul.mubr.msk.bf16.gmra.mxu0 %vm396_vm2, %v1241_v52  ;;  %1900 = vmatprep.mubr.msk.bf16.mxu1 %vm396_vm2, %v1105_v53 }
 0x119   : > { %1930 = vmatprep.mubr.msk.bf16.mxu0 %vm396_vm2, %v2128_v60  ;;  %v1369_v60 = vld [vmem:[#allocation2 + $0x91] sm:$0xff] }
 0x11a   : > { %v1373_v61 = vpack.c.bf16 %v1369_v60, %v972_v37 }
 0x11f   : > { %1901 = vmatmul.mubr.msk.bf16.vlgmr.msra.gmra.mxu1 %vm396_vm2, %v1106_v54 }
 0x120   : > { %1931 = vmatmul.mubr.msk.bf16.vlgmr.msra.gmra.mxu0 %vm396_vm2, %v2151_v6  ;;  %1904 = vmatprep.mubr.msk.bf16.mxu1 %vm396_vm2, %v1107_v55 }
 0x121   : > { %1934 = vmatprep.mubr.msk.bf16.mxu0 %vm396_vm2, %v2164_v15  ;;  %1919 = vmatpush3.bf16.msra.mxu1 %v1387_v56 }
 0x127   : > { %1905 = vmatmul.mubr.msk.bf16.gmra.mxu1 %vm396_vm2, %v1108_v58 }
 0x128   : > { %1935 = vmatmul.mubr.msk.bf16.gmra.mxu0 %vm396_vm2, %v1505_v59  ;;  %1920 = vmatprep.mubr.msk.bf16.mxu1 %vm396_vm2, %v578_v25 }
 0x12f   : > { %1921 = vmatmul.mubr.msk.bf16.vlgmr.msra.gmra.mxu1 %vm396_vm2, %v579_v28 }
 0x130   : > { %1924 = vmatprep.mubr.msk.bf16.mxu1 %vm396_vm2, %v580_v39 }
 0x137   : > { %1925 = vmatmul.mubr.msk.bf16.gmra.mxu1 %vm396_vm2, %v1373_v61 }
 0x1af   : > { %v1852_v62 = vpop.f32.mrf.mxu1 }
 0x1b0   : > { %v1872_v63 = vpop.f32.mrf.mxu0  ;;  %541 = vrot.lane.b32.xlu1 %v1852_v62, %s1975_s30 }
 0x1b1   : > { %805 = vrot.lane.b32.xlu0 %v1872_v63, %s1975_s30  ;;  %v498_v0 = vpop.f32.mrf.mxu1 }
 0x1b2   : > { %v762_v1 = vpop.f32.mrf.mxu0 }
 0x1b3   : > { %v1853_v2 = vpop.f32.mrf.mxu1 }
 0x1b4   : > { %v1873_v3 = vpop.f32.mrf.mxu0  ;;  %543 = vrot.lane.b32.xlu1 %v1853_v2, %s1975_s30 }
 0x1b5   : > { %537 = vrot.lane.b32.xlu0 %v498_v0, %s1975_s30  ;;  %v501_v4 = vpop.f32.mrf.mxu1 }
 0x1b6   : > { %v765_v5 = vpop.f32.mrf.mxu0 }
 0x1b7   : > { %v1856_v6 = vpop.f32.mrf.mxu1 }
 0x1b8   : > { %807 = vrot.lane.b32.xlu1 %v1873_v3, %s1975_s30  ;;  %v1876_v8 = vpop.f32.mrf.mxu0 }
 0x1b9   : > { %801 = vrot.lane.b32.xlu0 %v762_v1, %s1975_s30  ;;  %v514_v7 = vpop.f32.mrf.mxu1 }
 0x1ba   : > { %v778_v11 = vpop.f32.mrf.mxu0 }
 0x1bb   : > { %v1857_v9 = vpop.f32.mrf.mxu1 }
 0x1bc   : > { %803 = vrot.lane.b32.xlu1 %v765_v5, %s1975_s30  ;;  %v1877_v14 = vpop.f32.mrf.mxu0 }
 0x1bd   : > { %539 = vrot.lane.b32.xlu0 %v501_v4, %s1975_s30  ;;  %v517_v10 = vpop.f32.mrf.mxu1 }
 0x1be   : > { %v781_v17 = vpop.f32.mrf.mxu0 }
 0x1bf   : > { %v1862_v12 = vpop.f32.mrf.mxu1 }
 0x1c0   : > { %551 = vrot.lane.b32.xlu1 %v1857_v9, %s1975_s30  ;;  %v1892_v20 = vpop.f32.mrf.mxu0 }
 0x1c1   : > { %549 = vrot.lane.b32.xlu0 %v1856_v6, %s1975_s30  ;;  %v630_v13 = vpop.f32.mrf.mxu1 }
 0x1c2   : > { %v1026_v23 = vpop.f32.mrf.mxu0 }
 0x1c3   : > { %v1863_v15 = vpop.f32.mrf.mxu1 }
 0x1c4   : > { %815 = vrot.lane.b32.xlu1 %v1877_v14, %s1975_s30  ;;  %v1893_v25 = vpop.f32.mrf.mxu0 }
 0x1c5   : > { %813 = vrot.lane.b32.xlu0 %v1876_v8, %s1975_s30  ;;  %v633_v18 = vpop.f32.mrf.mxu1 }
 0x1c6   : > { %v1029_v28 = vpop.f32.mrf.mxu0 }
 0x1c7   : > { %v1866_v21 = vpop.f32.mrf.mxu1 }
 0x1c8   : > { %547 = vrot.lane.b32.xlu1 %v517_v10, %s1975_s30  ;;  %v1896_v31 = vpop.f32.mrf.mxu0 }
 0x1c9   : > { %545 = vrot.lane.b32.xlu0 %v514_v7, %s1975_s30  ;;  %v646_v24 = vpop.f32.mrf.mxu1 }
 0x1ca   : > { %v1042_v33 = vpop.f32.mrf.mxu0 }
 0x1cb   : > { %v1867_v27 = vpop.f32.mrf.mxu1 }
 0x1cc   : > { %811 = vrot.lane.b32.xlu1 %v781_v17, %s1975_s30  ;;  %v1897_v36 = vpop.f32.mrf.mxu0 }
 0x1cd   : > { %809 = vrot.lane.b32.xlu0 %v778_v11, %s1975_s30  ;;  %v649_v29 = vpop.f32.mrf.mxu1 }
 0x1ce   : > { %v1045_v39 = vpop.f32.mrf.mxu0 }
 0x1cf   : > { %v1882_v32 = vpop.f32.mrf.mxu1 }
 0x1d0   : > { %675 = vrot.lane.b32.xlu1 %v1863_v15, %s1975_s30  ;;  %v1912_v41 = vpop.f32.mrf.mxu0 }
 0x1d1   : > { %673 = vrot.lane.b32.xlu0 %v1862_v12, %s1975_s30  ;;  %v894_v35 = vpop.f32.mrf.mxu1 }
 0x1d2   : > { %v1291_v44 = vpop.f32.mrf.mxu0 }
 0x1d3   : > { %v1883_v37 = vpop.f32.mrf.mxu1 }
 0x1d4   : > { %1071 = vrot.lane.b32.xlu1 %v1893_v25, %s1975_s30  ;;  %v1913_v46 = vpop.f32.mrf.mxu0 }
 0x1d5   : > { %1069 = vrot.lane.b32.xlu0 %v1892_v20, %s1975_s30  ;;  %v897_v40 = vpop.f32.mrf.mxu1 }
 0x1d6   : > { %v1294_v48 = vpop.f32.mrf.mxu0 }
 0x1d7   : > { %v1886_v43 = vpop.f32.mrf.mxu1 }
 0x1d8   : > { %671 = vrot.lane.b32.xlu1 %v633_v18, %s1975_s30  ;;  %v1916_v51 = vpop.f32.mrf.mxu0 }
 0x1d9   : > { %669 = vrot.lane.b32.xlu0 %v630_v13, %s1975_s30  ;;  %v910_v45 = vpop.f32.mrf.mxu1 }
 0x1da   : > { %v1307_v53 = vpop.f32.mrf.mxu0 }
 0x1db   : > { %v1887_v47 = vpop.f32.mrf.mxu1 }
 0x1dc   : > { %1067 = vrot.lane.b32.xlu1 %v1029_v28, %s1975_s30  ;;  %v1917_v55 = vpop.f32.mrf.mxu0 }
 0x1dd   : > { %1065 = vrot.lane.b32.xlu0 %v1026_v23, %s1975_s30  ;;  %v913_v50 = vpop.f32.mrf.mxu1 }
 0x1de   : > { %v1310_v49 = vpop.f32.mrf.mxu0 }
 0x1df   : > { %v1902_v52 = vpop.f32.mrf.mxu1 }
 0x1e0   : > { %683 = vrot.lane.b32.xlu1 %v1867_v27, %s1975_s30  ;;  %v1932_v58 = vpop.f32.mrf.mxu0 }
 0x1e1   : > { %681 = vrot.lane.b32.xlu0 %v1866_v21, %s1975_s30  ;;  %v1158_v54 = vpop.f32.mrf.mxu1 }
 0x1e2   : > { %v1555_v60 = vpop.f32.mrf.mxu0 }
 0x1e3   : > { %v1903_v56 = vpop.f32.mrf.mxu1 }
 0x1e4   : > { %1079 = vrot.lane.b32.xlu1 %v1897_v36, %s1975_s30  ;;  %v1933_v62 = vpop.f32.mrf.mxu0 }
 0x1e5   : > { %1077 = vrot.lane.b32.xlu0 %v1896_v31, %s1975_s30  ;;  %v1161_v57 = vpop.f32.mrf.mxu1 }
 0x1e6   : > { %v1558_v0 = vpop.f32.mrf.mxu0 }
 0x1e7   : > { %v1906_v59 = vpop.f32.mrf.mxu1 }
 0x1e8   : > { %679 = vrot.lane.b32.xlu1 %v649_v29, %s1975_s30  ;;  %v1936_v2 = vpop.f32.mrf.mxu0 }
 0x1e9   : > { %677 = vrot.lane.b32.xlu0 %v646_v24, %s1975_s30  ;;  %v1174_v61 = vpop.f32.mrf.mxu1 }
 0x1ea   : > { %v1571_v4 = vpop.f32.mrf.mxu0 }
 0x1eb   : > { %v1907_v63 = vpop.f32.mrf.mxu1 }
 0x1ec   : > { %1075 = vrot.lane.b32.xlu1 %v1045_v39, %s1975_s30  ;;  %v1937_v8 = vpop.f32.mrf.mxu0 }
 0x1ed   : > { %1073 = vrot.lane.b32.xlu0 %v1042_v33, %s1975_s30  ;;  %v1177_v1 = vpop.f32.mrf.mxu1 }
 0x1ee   : > { %v1574_v12 = vpop.f32.mrf.mxu0 }
 0x1ef   : > { %v1922_v3 = vpop.f32.mrf.mxu1 }
 0x1f0   : > { %939 = vrot.lane.b32.xlu1 %v1883_v37, %s1975_s30 }
 0x1f1   : > { %937 = vrot.lane.b32.xlu0 %v1882_v32, %s1975_s30  ;;  %v1423_v5 = vpop.f32.mrf.mxu1 }
 0x1f3   : > { %v1923_v9 = vpop.f32.mrf.mxu1 }
 0x1f4   : > { %1336 = vrot.lane.b32.xlu1 %v1913_v46, %s1975_s30 }
 0x1f5   : > { %1334 = vrot.lane.b32.xlu0 %v1912_v41, %s1975_s30  ;;  %v1426_v13 = vpop.f32.mrf.mxu1 }
 0x1f7   : > { %v1926_v17 = vpop.f32.mrf.mxu1 }
 0x1f8   : > { %935 = vrot.lane.b32.xlu1 %v897_v40, %s1975_s30 }
 0x1f9   : > { %933 = vrot.lane.b32.xlu0 %v894_v35, %s1975_s30  ;;  %v1439_v21 = vpop.f32.mrf.mxu1 }
 0x1fb   : > { %v1927_v25 = vpop.f32.mrf.mxu1 }
 0x1fc   : > { %1332 = vrot.lane.b32.xlu1 %v1294_v48, %s1975_s30 }
 0x1fd   : > { %1330 = vrot.lane.b32.xlu0 %v1291_v44, %s1975_s30  ;;  %v1442_v29 = vpop.f32.mrf.mxu1 }
 0x200   : > { %947 = vrot.lane.b32.xlu1 %v1887_v47, %s1975_s30 }
 0x201   : > { %945 = vrot.lane.b32.xlu0 %v1886_v43, %s1975_s30 }
 0x204   : > { %1344 = vrot.lane.b32.xlu1 %v1917_v55, %s1975_s30 }
 0x205   : > { %1342 = vrot.lane.b32.xlu0 %v1916_v51, %s1975_s30 }
 0x208   : > { %943 = vrot.lane.b32.xlu1 %v913_v50, %s1975_s30 }
 0x209   : > { %941 = vrot.lane.b32.xlu0 %v910_v45, %s1975_s30 }
 0x20c   : > { %1340 = vrot.lane.b32.xlu1 %v1310_v49, %s1975_s30 }
 0x20d   : > { %1338 = vrot.lane.b32.xlu0 %v1307_v53, %s1975_s30 }
 0x210   : > { %1203 = vrot.lane.b32.xlu1 %v1903_v56, %s1975_s30 }
 0x211   : > { %1201 = vrot.lane.b32.xlu0 %v1902_v52, %s1975_s30 }
 0x214   : > { %1600 = vrot.lane.b32.xlu1 %v1933_v62, %s1975_s30 }
 0x215   : > { %1598 = vrot.lane.b32.xlu0 %v1932_v58, %s1975_s30 }
 0x218   : > { %1199 = vrot.lane.b32.xlu1 %v1161_v57, %s1975_s30 }
 0x219   : > { %1197 = vrot.lane.b32.xlu0 %v1158_v54, %s1975_s30 }
 0x21c   : > { %1596 = vrot.lane.b32.xlu1 %v1558_v0, %s1975_s30 }
 0x21d   : > { %1594 = vrot.lane.b32.xlu0 %v1555_v60, %s1975_s30 }
 0x220   : > { %1211 = vrot.lane.b32.xlu1 %v1907_v63, %s1975_s30 }
 0x221   : > { %1209 = vrot.lane.b32.xlu0 %v1906_v59, %s1975_s30 }
 0x222   : > { %v542_v6 = vpop.permute.xlu1 %541 }
 0x223   : > { %v806_v7 = vpop.permute.xlu0 %805  ;;  %v563_v36 = vadd.f32 %v2071_v16, %v542_v6 }
 0x224   : > { %1207 = vrot.lane.b32.xlu1 %v1177_v1, %s1975_s30 }
 0x225   : > { %1205 = vrot.lane.b32.xlu0 %v1174_v61, %s1975_s30 }
 0x226   : > { %v544_v10 = vpop.permute.xlu1 %543 }
 0x227   : > { %v538_v11 = vpop.permute.xlu0 %537  ;;  %v564_v37 = vadd.f32 %v2080_v22, %v544_v10 }
 0x228   : > { %1604 = vrot.lane.b32.xlu1 %v1574_v12, %s1975_s30  ;;  %v561_v48 = vadd.f32 %v538_v11, %v2077_v19 }
 0x229   : > { %1602 = vrot.lane.b32.xlu0 %v1571_v4, %s1975_s30 }
 0x22a   : > { %v808_v15 = vpop.permute.xlu1 %807 }
 0x22b   : > { %v802_v14 = vpop.permute.xlu0 %801 }
 0x22c   : > { %1468 = vrot.lane.b32.xlu1 %v1923_v9, %s1975_s30 }
 0x22d   : > { %1466 = vrot.lane.b32.xlu0 %v1922_v3, %s1975_s30 }
 0x22e   : > { %v804_v20 = vpop.permute.xlu1 %803 }
 0x22f   : > { %v540_v18 = vpop.permute.xlu0 %539 }
 0x230   : > { %1464 = vrot.lane.b32.xlu1 %v1426_v13, %s1975_s30  ;;  %v562_v50 = vadd.f32 %v540_v18, %v2083_v26 }
 0x231   : > { %1462 = vrot.lane.b32.xlu0 %v1423_v5, %s1975_s30 }
 0x232   : > { %v552_v24 = vpop.permute.xlu1 %551 }
 0x233   : > { %v550_v23 = vpop.permute.xlu0 %549  ;;  %v568_v57 = vadd.f32 %v2095_v38, %v552_v24 }
 0x234   : > { %1476 = vrot.lane.b32.xlu1 %v1927_v25, %s1975_s30  ;;  %v567_v49 = vadd.f32 %v2087_v30, %v550_v23 }
 0x235   : > { %1474 = vrot.lane.b32.xlu0 %v1926_v17, %s1975_s30 }
 0x236   : > { %v816_v28 = vpop.permute.xlu1 %815 }
 0x237   : > { %v814_v27 = vpop.permute.xlu0 %813 }
 0x238   : > { %1472 = vrot.lane.b32.xlu1 %v1442_v29, %s1975_s30 }
 0x239   : > { %1470 = vrot.lane.b32.xlu0 %v1439_v21, %s1975_s30 }
 0x23a   : > { %v548_v32 = vpop.permute.xlu1 %547 }
 0x23b   : > { %v546_v31 = vpop.permute.xlu0 %545  ;;  %v566_v1 = vadd.f32 %v548_v32, %v2099_v42 }
 0x23c   : > { %1608 = vrot.lane.b32.xlu1 %v1937_v8, %s1975_s30  ;;  %v565_v0 = vadd.f32 %v546_v31, %v2091_v34 }
 0x23d   : > { %1606 = vrot.lane.b32.xlu0 %v1936_v2, %s1975_s30 }
 0x23e   : > { %v812_v35 = vpop.permute.xlu1 %811 }
 0x23f   : > { %v810_v33 = vpop.permute.xlu0 %809 }
 0x242   : > { %v676_v40 = vpop.permute.xlu1 %675 }
 0x243   : > { %v674_v39 = vpop.permute.xlu0 %673  ;;  %v696_v43 = vadd.f32 %v676_v40, %v564_v37 }
 0x244   : > { %v695_v41 = vadd.f32 %v674_v39, %v563_v36 }
 0x245   : > { %v828_v45 = vadd.f32 %v808_v15, %v696_v43 }
 0x246   : > { %v827_v44 = vadd.f32 %v806_v7, %v695_v41  ;;  %v1072_v47 = vpop.permute.xlu1 %1071 }
 0x247   : > { %v1070_v46 = vpop.permute.xlu0 %1069 }
 0x24a   : > { %v672_v52 = vpop.permute.xlu1 %671 }
 0x24b   : > { %v670_v51 = vpop.permute.xlu0 %669  ;;  %v694_v54 = vadd.f32 %v672_v52, %v562_v50 }
 0x24c   : > { %v693_v53 = vadd.f32 %v670_v51, %v561_v48 }
 0x24d   : > { %v826_v16 = vadd.f32 %v804_v20, %v694_v54 }
 0x24e   : > { %v825_v55 = vadd.f32 %v802_v14, %v693_v53  ;;  %v1068_v22 = vpop.permute.xlu1 %1067 }
 0x24f   : > { %v1066_v56 = vpop.permute.xlu0 %1065 }
 0x252   : > { %v684_v59 = vpop.permute.xlu1 %683 }
 0x253   : > { %v682_v58 = vpop.permute.xlu0 %681  ;;  %v700_v61 = vadd.f32 %v684_v59, %v568_v57 }
 0x254   : > { %v699_v60 = vadd.f32 %v682_v58, %v567_v49 }
 0x255   : > { %v832_v19 = vadd.f32 %v816_v28, %v700_v61 }
 0x256   : > { %v831_v62 = vadd.f32 %v814_v27, %v699_v60  ;;  %v1080_v26 = vpop.permute.xlu1 %1079 }
 0x257   : > { %v1078_v63 = vpop.permute.xlu0 %1077 }
 0x25a   : > { %v680_v3 = vpop.permute.xlu1 %679 }
 0x25b   : > { %v678_v2 = vpop.permute.xlu0 %677  ;;  %v698_v5 = vadd.f32 %v680_v3, %v566_v1 }
 0x25c   : > { %v697_v4 = vadd.f32 %v678_v2, %v565_v0 }
 0x25d   : > { %v830_v30 = vadd.f32 %v812_v35, %v698_v5 }
 0x25e   : > { %v829_v6 = vadd.f32 %v810_v33, %v697_v4  ;;  %v1076_v38 = vpop.permute.xlu1 %1075 }
 0x25f   : > { %v1074_v7 = vpop.permute.xlu0 %1073 }
 0x262   : > { %v940_v9 = vpop.permute.xlu1 %939 }
 0x263   : > { %v938_v8 = vpop.permute.xlu0 %937  ;;  %v960_v11 = vadd.f32 %v940_v9, %v828_v45 }
 0x264   : > { %v959_v10 = vadd.f32 %v938_v8, %v827_v44 }
 0x265   : > { %v1092_v13 = vadd.f32 %v1072_v47, %v960_v11 }
 0x266   : > { %v1091_v12 = vadd.f32 %v1070_v46, %v959_v10  ;;  %v1337_v15 = vpop.permute.xlu1 %1336 }
 0x267   : > { %v1335_v14 = vpop.permute.xlu0 %1334 }
 0x26a   : > { %v936_v34 = vpop.permute.xlu1 %935 }
 0x26b   : > { %v934_v17 = vpop.permute.xlu0 %933  ;;  %v958_v42 = vadd.f32 %v936_v34, %v826_v16 }
 0x26c   : > { %v957_v18 = vadd.f32 %v934_v17, %v825_v55 }
 0x26d   : > { %v1090_v21 = vadd.f32 %v1068_v22, %v958_v42 }
 0x26e   : > { %v1089_v20 = vadd.f32 %v1066_v56, %v957_v18  ;;  %v1333_v24 = vpop.permute.xlu1 %1332 }
 0x26f   : > { %v1331_v23 = vpop.permute.xlu0 %1330 }
 0x272   : > { %v948_v27 = vpop.permute.xlu1 %947 }
 0x273   : > { %v946_v25 = vpop.permute.xlu0 %945  ;;  %v964_v29 = vadd.f32 %v948_v27, %v832_v19 }
 0x274   : > { %v963_v28 = vadd.f32 %v946_v25, %v831_v62 }
 0x275   : > { %v1096_v32 = vadd.f32 %v1080_v26, %v964_v29 }
 0x276   : > { %v1095_v31 = vadd.f32 %v1078_v63, %v963_v28  ;;  %v1345_v35 = vpop.permute.xlu1 %1344 }
 0x277   : > { %v1343_v33 = vpop.permute.xlu0 %1342 }
 0x27a   : > { %v944_v37 = vpop.permute.xlu1 %943 }
 0x27b   : > { %v942_v36 = vpop.permute.xlu0 %941  ;;  %v962_v40 = vadd.f32 %v944_v37, %v830_v30 }
 0x27c   : > { %v961_v39 = vadd.f32 %v942_v36, %v829_v6 }
 0x27d   : > { %v1094_v43 = vadd.f32 %v1076_v38, %v962_v40 }
 0x27e   : > { %v1093_v41 = vadd.f32 %v1074_v7, %v961_v39  ;;  %v1341_v45 = vpop.permute.xlu1 %1340 }
 0x27f   : > { %v1339_v44 = vpop.permute.xlu0 %1338 }
 0x282   : > { %v1204_v47 = vpop.permute.xlu1 %1203 }
 0x283   : > { %v1202_v46 = vpop.permute.xlu0 %1201  ;;  %v1224_v57 = vadd.f32 %v1204_v47, %v1092_v13 }
 0x284   : > { %v1223_v49 = vadd.f32 %v1202_v46, %v1091_v12 }
 0x285   : > { %v1357_v19 = vadd.f32 %v1337_v15, %v1224_v57 }
 0x286   : > { %v1601_v50 = vpop.permute.xlu1 %1600  ;;  %v1356_v62 = vadd.f32 %v1335_v14, %v1223_v49 }
 0x287   : > { %v1599_v48 = vpop.permute.xlu0 %1598 }
 0x28a   : > { %v1200_v52 = vpop.permute.xlu1 %1199 }
 0x28b   : > { %v1198_v51 = vpop.permute.xlu0 %1197  ;;  %v1222_v61 = vadd.f32 %v1200_v52, %v1090_v21 }
 0x28c   : > { %v1221_v60 = vadd.f32 %v1198_v51, %v1089_v20 }
 0x28d   : > { %v1355_v5 = vadd.f32 %v1333_v24, %v1222_v61 }
 0x28e   : > { %v1597_v54 = vpop.permute.xlu1 %1596  ;;  %v1354_v4 = vadd.f32 %v1331_v23, %v1221_v60 }
 0x28f   : > { %v1595_v53 = vpop.permute.xlu0 %1594 }
 0x292   : > { %v1212_v16 = vpop.permute.xlu1 %1211 }
 0x293   : > { %v1210_v55 = vpop.permute.xlu0 %1209  ;;  %v1228_v15 = vadd.f32 %v1212_v16, %v1096_v32 }
 0x294   : > { %v1227_v14 = vadd.f32 %v1210_v55, %v1095_v31 }
 0x295   : > { %v1361_v24 = vadd.f32 %v1345_v35, %v1228_v15 }
 0x296   : > { %v1208_v22 = vpop.permute.xlu1 %1207  ;;  %v1360_v23 = vadd.f32 %v1343_v33, %v1227_v14 }
 0x297   : > { %v1206_v56 = vpop.permute.xlu0 %1205  ;;  %v1226_v9 = vadd.f32 %v1208_v22, %v1094_v43 }
 0x298   : > { %v1225_v8 = vadd.f32 %v1206_v56, %v1093_v41 }
 0x299   : > { %v1359_v34 = vadd.f32 %v1341_v45, %v1226_v9 }
 0x29a   : > { %v1605_v59 = vpop.permute.xlu1 %1604  ;;  %v1358_v17 = vadd.f32 %v1339_v44, %v1225_v8 }
 0x29b   : > { %v1603_v58 = vpop.permute.xlu0 %1602 }
 0x29e   : > { %v1469_v26 = vpop.permute.xlu1 %1468 }
 0x29f   : > { %v1467_v63 = vpop.permute.xlu0 %1466  ;;  %v1489_v1 = vadd.f32 %v1469_v26, %v1357_v19 }
 0x2a0   : > { %v1488_v0 = vadd.f32 %v1467_v63, %v1356_v62 }
 0x2a1   : > { %v1621_v3 = vadd.f32 %v1601_v50, %v1489_v1 }
 0x2a2   : > { %v1620_v2 = vadd.f32 %v1599_v48, %v1488_v0  ;;  %v1465_v30 = vpop.permute.xlu1 %1464 }
 0x2a3   : > { %v1463_v6 = vpop.permute.xlu0 %1462  ;;  %v1487_v38 = vadd.f32 %v1465_v30, %v1355_v5  ;;  %1640 = vrot.lane.b32.xlu1 %v1621_v3, %s1976_s6 }
 0x2a4   : > { %v1486_v7 = vadd.f32 %v1463_v6, %v1354_v4  ;;  %1638 = vrot.lane.b32.xlu0 %v1620_v2, %s1976_s6 }
 0x2a5   : > { %v1619_v11 = vadd.f32 %v1597_v54, %v1487_v38 }
 0x2a6   : > { %v1618_v10 = vadd.f32 %v1595_v53, %v1486_v7  ;;  %v1477_v13 = vpop.permute.xlu1 %1476 }
 0x2a7   : > { %v1475_v12 = vpop.permute.xlu0 %1474  ;;  %1636 = vrot.lane.b32.xlu1 %v1619_v11, %s1976_s6  ;;  %v1493_v37 = vadd.f32 %v1477_v13, %v1361_v24 }
 0x2a8   : > { %1634 = vrot.lane.b32.xlu0 %v1618_v10, %s1976_s6  ;;  %v1492_v36 = vadd.f32 %v1475_v12, %v1360_v23 }
 0x2aa   : > { %v1473_v42 = vpop.permute.xlu1 %1472 }
 0x2ab   : > { %v1471_v18 = vpop.permute.xlu0 %1470  ;;  %v1491_v21 = vadd.f32 %v1473_v42, %v1359_v34 }
 0x2ac   : > { %v1490_v20 = vadd.f32 %v1471_v18, %v1358_v17 }
 0x2ad   : > { %v1623_v27 = vadd.f32 %v1605_v59, %v1491_v21 }
 0x2ae   : > { %v1622_v25 = vadd.f32 %v1603_v58, %v1490_v20  ;;  %v1609_v29 = vpop.permute.xlu1 %1608 }
 0x2af   : > { %v1607_v28 = vpop.permute.xlu0 %1606  ;;  %1644 = vrot.lane.b32.xlu1 %v1623_v27, %s1976_s6  ;;  %v1625_v32 = vadd.f32 %v1609_v29, %v1493_v37 }
 0x2b0   : > { %1642 = vrot.lane.b32.xlu0 %v1622_v25, %s1976_s6  ;;  %v1624_v31 = vadd.f32 %v1607_v28, %v1492_v36 }
 0x2b3   : > { %1648 = vrot.lane.b32.xlu1 %v1625_v32, %s1976_s6 }
 0x2b4   : > { %1646 = vrot.lane.b32.xlu0 %v1624_v31, %s1976_s6 }
 0x315   : > { %v1641_v35 = vpop.permute.xlu1 %1640 }
 0x316   : > { %v1639_v33 = vpop.permute.xlu0 %1638  ;;  %1661 = vst.msk [vmem:[%s226_s10 + $0x18] sm:$0xff] %vm396_vm2, %v1641_v35 }
 0x317   : > { %1660 = vst.msk [vmem:[%s226_s10 + $0x10] sm:$0xff] %vm396_vm2, %v1639_v33 }
 0x319   : > { %v1637_v40 = vpop.permute.xlu1 %1636 }
 0x31a   : > { %v1635_v39 = vpop.permute.xlu0 %1634  ;;  %1659 = vst.msk [vmem:[%s226_s10 + $0x8] sm:$0xff] %vm396_vm2, %v1637_v40 }
 0x31b   : > { %1658 = vst.msk [vmem:[%s226_s10] sm:$0xff] %vm396_vm2, %v1635_v39 }
 0x321   : > { %v1645_v43 = vpop.permute.xlu1 %1644 }
 0x322   : > { %v1643_v41 = vpop.permute.xlu0 %1642  ;;  %1663 = vst.msk [vmem:[%s226_s10 + $0x28] sm:$0xff] %vm396_vm2, %v1645_v43 }
 0x323   : > { %1662 = vst.msk [vmem:[%s226_s10 + $0x20] sm:$0xff] %vm396_vm2, %v1643_v41 }
 0x325   : > { %v1649_v45 = vpop.permute.xlu1 %1648 }
 0x326   : > { %v1647_v44 = vpop.permute.xlu0 %1646  ;;  %1665 = vst.msk [vmem:[%s226_s10 + $0x38] sm:$0xff] %vm396_vm2, %v1649_v45 }
 0x327   : > { %1664 = vst.msk [vmem:[%s226_s10 + $0x30] sm:$0xff] %vm396_vm2, %v1647_v44 }
 0x328 PF: > { %s15_s18 = sadd.s32 1, %s1972_s18  }
 0x329   : > { %p12_p5 = scmp.ge.s32.totalorder %s15_s18, 4  }
 0x32b   :  { %14 = sbr.rel (!%p12_p5) target bundleno = 1 (0x1), region = 72 }

// kernel: network_block.3
= control target key start
LH: loop header
LB: loop body
LE: loop exit
PB: predicated region body
PF: predicated region fallthrough
CT: control target
= control target key end

     0   :  { %12 = vsyncpa [#allocation5], 0  ;;  %s3413_s0 = inlined_call_operand.vmem [shape: f32[2,8,8,8], index: 0, kind: input, shape index: {}]   ;;  %s3414_s1 = inlined_call_operand.vmem [shape: bf16[72,8], index: 1, kind: input, shape index: {}]   ;;  %s3415_s2 = inlined_call_operand.vmem [shape: bf16[72,8], index: 2, kind: input, shape index: {}]   ;;  %s3416_s3 = inlined_call_operand.vmem [shape: f32[1,8], index: 3, kind: input, shape index: {}]   ;;  %s3417_s4 = inlined_call_operand.vmem [shape: f32[1,8], index: 4, kind: input, shape index: {}]   ;;  %s3418_s5 = inlined_call_operand.vmem [shape: f32[1,8], index: 5, kind: input, shape index: {}]   ;;  %s3419_s6 = inlined_call_operand.vmem [shape: f32[1,8], index: 6, kind: input, shape index: {}]   ;;  %s3420_s7 = inlined_call_operand.hbm [shape: f32[2,8,8,8], index: 7, kind: output, shape index: {}]  }
   0x1   :  { %14 = vsyncpa [#allocation5 + $0x1], 0  ;;  %s2838_s24 = smov 0   ;;  %s2840_s25 = smov 0  }
   0x2   :  { %s2842_s26 = smov 0   ;;  %s2844_s27 = smov 0  }
   0x3 LB: > { %s2859_s28 = sadd.s32 4294967295, %s2792_s27   ;;  %s2311_s29 = sadd.s32 4294967294, %s2792_s27   ;;  %s2792_s27 = sphi %s2844_s27, %s3463_s27   ;;  %s2788_s26 = sphi %s2842_s26, %s3462_s26   ;;  %s2784_s25 = sphi %s2840_s25, %s3461_s25   ;;  %s2780_s24 = sphi %s2838_s24, %s3460_s24  }
   0x4   : > { %s2863_s30 = sadd.s32 1, %s2792_s27   ;;  %s179_s8 = sadd.s32 1, %s2788_s26 }
   0x5   : > { %s176_s9 = ssub.s32 %s2792_s27, %s2863_s30  ;;  %p189_p0 = scmp.ne.s32.totalorder %s2788_s26, %s2784_s25 }
   0x6   : > { %p177_p1 = scmp.eq.s32.totalorder %s176_s9, 0  ;;  %p190_p2 = scmp.eq.s32.totalorder %s2859_s28, 1 }
   0x7   : > { %p195_p3 = scmp.ne.s32.totalorder %s2784_s25, %s2780_s24  ;;  %p196_p4 = scmp.eq.s32.totalorder %s2311_s29, 1 }
   0x8   : > { %s2874_s10 = scalar_select %p177_p1, %s2788_s26, %s179_s8  }
   0x9   : > { %p2876_p5 = por %p190_p2, %p189_p0  ;;  %p2880_p6 = por %p196_p4, %p195_p3 }
   0xa   : > { %p2314_p7 = scmp.ge.s32.totalorder %s2792_s27, 1  ;;  %p240_p8 = scmp.lt.s32.totalorder %s2792_s27, 3 }
   0xc   : > { %p241_p9 = pnand %p2314_p7, %p240_p8 }
   0xe   : > { %244 = sbr.rel (%p241_p9) target bundleno = 625 (0x271), region = 48 }
  0x13   : > { %v279_v0 = vld [vmem:[%s3414_s1 + $0x4] sm:$0xf]  ;;  %vm409_vm0 = vcmask 1043456   ;;  %v278_v1 = vld [vmem:[%s3414_s1] sm:$0xf]  ;;  %p272_p10 = scmp.lt.s32.totalorder %s2859_s28, 1 }
  0x14   : > { %2671 = vmatprep.subr.msk.bf16.mxu0 %vm409_vm0, %v279_v0  ;;  %v411_v2 = vsel %vm409_vm0, %v279_v0, 0  ;;  %2672 = vmatprep.subr.msk.bf16.mxu1 %vm409_vm0, %v278_v1  ;;  %v491_v3 = vsel %vm409_vm0, %v278_v1, 0  ;;  %vm342_vm1 = vcmask 64512   ;;  %vm344_vm2 = vcmask 58368   ;;  %v2903_v4 = vld [vmem:[%s3414_s1 + $0x8] sm:$0xf] }
  0x15   : > { %2492 = vmatpush3.bf16.msra.mxu0 %v411_v2  ;;  %2502 = vmatpush3.bf16.msra.mxu1 %v491_v3  ;;  %s2898_s17 = scalar_select %p272_p10, %s2859_s28, 1  ;;  %v2794_v5 = vmov 0.0   ;;  %v2950_v6 = vld [vmem:[%s3414_s1 + $0xc] sm:$0xf]  ;;  %v2318_v7 = vld [vmem:[%s3416_s3] ss:$0 sm:$0xff] }
  0x16   : > { %343 = vst.msk [vmem:[#allocation2] sm:$0xff] %vm342_vm1, %v2794_v5  ;;  %346 = vst.msk [vmem:[#allocation2 + $0x10] sm:$0xff] %vm342_vm1, %v2794_v5  ;;  %2673 = vmatprep.subr.msk.bf16.mxu0 %vm409_vm0, %v2903_v4  ;;  %2674 = vmatprep.subr.msk.bf16.mxu1 %vm409_vm0, %v2950_v6  ;;  %v2319_v8 = vld [vmem:[%s3417_s4] ss:$0 sm:$0xff]  ;;  %v583_v53 = vsel %vm409_vm0, %v2903_v4, 0  ;;  %v683_v59 = vsel %vm409_vm0, %v2950_v6, 0 }
  0x17   : > { %345 = vst.msk [vmem:[#allocation2 + $0x8] sm:$0x3] %vm344_vm2, %v2794_v5  ;;  %347 = vst.msk [vmem:[#allocation2 + $0x18] sm:$0x3] %vm344_vm2, %v2794_v5  ;;  %s2399_s22 = sshll.u32 %s2898_s17, 6  ;;  %s2400_s29 = sshll.u32 %s2859_s28, 10 }
  0x18   : > { %348 = vst.msk [vmem:[#allocation2 + $0x20] sm:$0xff] %vm342_vm1, %v2794_v5  ;;  %350 = vst.msk [vmem:[#allocation2 + $0x30] sm:$0xff] %vm342_vm1, %v2794_v5  ;;  %s2961_s13 = scalar_lea.vmem %s3413_s0, %s2399_s22  ;;  %v282_v62 = vld [vmem:[%s3414_s1 + $0x10] sm:$0xf]  ;;  %v283_v63 = vld [vmem:[%s3414_s1 + $0x14] sm:$0xf]  ;;  %s3363_s15 = scalar_lea.hbm %s3420_s7, %s2400_s29 }
  0x19   : > { %349 = vst.msk [vmem:[#allocation2 + $0x28] sm:$0x3] %vm344_vm2, %v2794_v5  ;;  %351 = vst.msk [vmem:[#allocation2 + $0x38] sm:$0x3] %vm344_vm2, %v2794_v5  ;;  %v2967_v9 = vld [vmem:[%s2961_s13] sm:$0xff]  ;;  %v2970_v10 = vld [vmem:[%s2961_s13 + $0x8] sm:$0xff] }
  0x1a   : > { %352 = vst.msk [vmem:[#allocation2 + $0x40] sm:$0xff] %vm342_vm1, %v2794_v5  ;;  %354 = vst.msk [vmem:[#allocation2 + $0x50] sm:$0xff] %vm342_vm1, %v2794_v5  ;;  %v2973_v11 = vld [vmem:[%s2961_s13 + $0x10] sm:$0xff]  ;;  %v311_v12 = vmul.f32 %v2318_v7, %v2967_v9  ;;  %v312_v13 = vmul.f32 %v2318_v7, %v2970_v10  ;;  %v2979_v15 = vld [vmem:[%s2961_s13 + $0x18] sm:$0xff]  ;;  %s2795_s17 = smov [#allocation4]  }
  0x1b   : > { %353 = vst.msk [vmem:[#allocation2 + $0x48] sm:$0x3] %vm344_vm2, %v2794_v5  ;;  %355 = vst.msk [vmem:[#allocation2 + $0x58] sm:$0x3] %vm344_vm2, %v2794_v5  ;;  %v313_v14 = vmul.f32 %v2318_v7, %v2973_v11  ;;  %v2982_v16 = vld [vmem:[%s2961_s13 + $0x20] sm:$0xff]  ;;  %v301_v17 = vld [vmem:[%s2961_s13 + $0x28] sm:$0xff]  ;;  %v314_v18 = vmul.f32 %v2318_v7, %v2979_v15 }
  0x1c   : > { %356 = vst.msk [vmem:[#allocation2 + $0x60] sm:$0xff] %vm342_vm1, %v2794_v5  ;;  %358 = vst.msk [vmem:[#allocation2 + $0x70] sm:$0xff] %vm342_vm1, %v2794_v5  ;;  %v315_v19 = vmul.f32 %v2318_v7, %v2982_v16  ;;  %v2988_v20 = vld [vmem:[%s2961_s13 + $0x30] sm:$0xff]  ;;  %v316_v21 = vmul.f32 %v2318_v7, %v301_v17  ;;  %v2991_v22 = vld [vmem:[%s2961_s13 + $0x38] sm:$0xff]  ;;  %v326_v23 = vadd.f32 %v2319_v8, %v311_v12  ;;  %s2736_s18 = sshll.u32 %s2795_s17, 4  ;;  %s2737_s18 = int_to_ptr.vmem [resolvable:$false] %s2736_s18 }
  0x1d   : > { %357 = vst.msk [vmem:[#allocation2 + $0x68] sm:$0x3] %vm344_vm2, %v2794_v5  ;;  %359 = vst.msk [vmem:[#allocation2 + $0x78] sm:$0x3] %vm344_vm2, %v2794_v5  ;;  %v327_v24 = vadd.f32 %v2319_v8, %v312_v13  ;;  %v328_v25 = vadd.f32 %v2319_v8, %v313_v14  ;;  %v317_v26 = vmul.f32 %v2318_v7, %v2988_v20  ;;  %v373_v42 = vld [vmem:[#allocation2] sm:$0xff]  ;;  %s2738_s19 = scalar_lea.vmem %s2737_s18, 2048 }
  0x1e   : > { %360 = vst.msk [vmem:[#allocation2 + $0x80] sm:$0xff] %vm342_vm1, %v2794_v5  ;;  %362 = vst.msk [vmem:[#allocation2 + $0x90] sm:$0xff] %vm342_vm1, %v2794_v5  ;;  %v329_v27 = vadd.f32 %v2319_v8, %v314_v18  ;;  %v330_v28 = vadd.f32 %v2319_v8, %v315_v19  ;;  %v331_v29 = vadd.f32 %v2319_v8, %v316_v21  ;;  %v334_v31 = vmax.f32 %v326_v23, 0.0  ;;  %v385_v41 = vld [vmem:[#allocation2 + $0x1] sm:$0xff] }
  0x1f   : > { %361 = vst.msk [vmem:[#allocation2 + $0x88] sm:$0x3] %vm344_vm2, %v2794_v5  ;;  %363 = vst.msk [vmem:[#allocation2 + $0x98] sm:$0x3] %vm344_vm2, %v2794_v5  ;;  %v318_v30 = vmul.f32 %v2318_v7, %v2991_v22  ;;  %v335_v32 = vmax.f32 %v327_v24, 0.0  ;;  %v336_v33 = vmax.f32 %v328_v25, 0.0  ;;  %v332_v34 = vadd.f32 %v2319_v8, %v317_v26 }
  0x20   : > { %1297 = vst.msk [vmem:[#allocation3] sm:$0xff] %vm342_vm1, %v2794_v5  ;;  %1299 = vst.msk [vmem:[#allocation3 + $0x10] sm:$0xff] %vm342_vm1, %v2794_v5  ;;  %v337_v35 = vmax.f32 %v329_v27, 0.0  ;;  %v338_v36 = vmax.f32 %v330_v28, 0.0  ;;  %v339_v37 = vmax.f32 %v331_v29, 0.0  ;;  %v558_v3 = vld [vmem:[#allocation2 + $0x2] sm:$0xff] }
  0x21   : > { %1298 = vst.msk [vmem:[#allocation3 + $0x8] sm:$0x3] %vm344_vm2, %v2794_v5  ;;  %1300 = vst.msk [vmem:[#allocation3 + $0x18] sm:$0x3] %vm344_vm2, %v2794_v5  ;;  %v333_v38 = vadd.f32 %v2319_v8, %v318_v30  ;;  %v340_v39 = vmax.f32 %v332_v34, 0.0  ;;  %v783_v23 = vsel %vm409_vm0, %v282_v62, 0 }
  0x22   : > { %1301 = vst.msk [vmem:[#allocation3 + $0x20] sm:$0xff] %vm342_vm1, %v2794_v5  ;;  %1303 = vst.msk [vmem:[#allocation3 + $0x30] sm:$0xff] %vm342_vm1, %v2794_v5  ;;  %v883_v25 = vsel %vm409_vm0, %v283_v63, 0  ;;  %v284_v26 = vld [vmem:[%s3414_s1 + $0x18] sm:$0xf] }
  0x23   : > { %1302 = vst.msk [vmem:[#allocation3 + $0x28] sm:$0x3] %vm344_vm2, %v2794_v5  ;;  %1304 = vst.msk [vmem:[#allocation3 + $0x38] sm:$0x3] %vm344_vm2, %v2794_v5  ;;  %v341_v40 = vmax.f32 %v333_v38, 0.0  ;;  %v984_v38 = vsel %vm409_vm0, %v284_v26, 0 }
  0x24   : > { %1305 = vst.msk [vmem:[#allocation3 + $0x40] sm:$0xff] %vm342_vm1, %v2794_v5  ;;  %1307 = vst.msk [vmem:[#allocation3 + $0x50] sm:$0xff] %vm342_vm1, %v2794_v5  ;;  %v285_v27 = vld [vmem:[%s3414_s1 + $0x1c] sm:$0xf] }
  0x25   : > { %1306 = vst.msk [vmem:[#allocation3 + $0x48] sm:$0x3] %vm344_vm2, %v2794_v5  ;;  %1308 = vst.msk [vmem:[#allocation3 + $0x58] sm:$0x3] %vm344_vm2, %v2794_v5 }
  0x26   : > { %1309 = vst.msk [vmem:[#allocation3 + $0x60] sm:$0xff] %vm342_vm1, %v2794_v5  ;;  %1311 = vst.msk [vmem:[#allocation3 + $0x70] sm:$0xff] %vm342_vm1, %v2794_v5 }
  0x27   : > { %1310 = vst.msk [vmem:[#allocation3 + $0x68] sm:$0x3] %vm344_vm2, %v2794_v5  ;;  %1312 = vst.msk [vmem:[#allocation3 + $0x78] sm:$0x3] %vm344_vm2, %v2794_v5 }
  0x28   : > { %1313 = vst.msk [vmem:[#allocation3 + $0x80] sm:$0xff] %vm342_vm1, %v2794_v5  ;;  %1315 = vst.msk [vmem:[#allocation3 + $0x90] sm:$0xff] %vm342_vm1, %v2794_v5 }
  0x29   : > { %1314 = vst.msk [vmem:[#allocation3 + $0x88] sm:$0x3] %vm344_vm2, %v2794_v5  ;;  %1316 = vst.msk [vmem:[#allocation3 + $0x98] sm:$0x3] %vm344_vm2, %v2794_v5 }
  0x2a   : > { %3432 = vst [vmem:[#allocation7_spill] sm:$0xff] %v2967_v9  ;;  %3433 = vst [vmem:[#allocation8_spill] sm:$0xff] %v2970_v10 }
  0x2b   : > { %3434 = vst [vmem:[#allocation9_spill] sm:$0xff] %v2973_v11  ;;  %3435 = vst [vmem:[#allocation10_spill] sm:$0xff] %v2979_v15 }
  0x2c   : > { %3436 = vst [vmem:[#allocation11_spill] sm:$0xff] %v2982_v16  ;;  %3437 = vst [vmem:[#allocation12_spill] sm:$0xff] %v2988_v20 }
  0x2d   : > { %3438 = vst [vmem:[#allocation13_spill] sm:$0xff] %v2991_v22  ;;  %365 = vst.msk [vmem:[#allocation2 + $0x11] sm:$0xff] %vm342_vm1, %v334_v31 }
  0x2e   : > { %366 = vst.msk [vmem:[#allocation2 + $0x21] sm:$0xff] %vm342_vm1, %v335_v32  ;;  %367 = vst.msk [vmem:[#allocation2 + $0x31] sm:$0xff] %vm342_vm1, %v336_v33 }
  0x2f   : > { %368 = vst.msk [vmem:[#allocation2 + $0x41] sm:$0xff] %vm342_vm1, %v337_v35  ;;  %369 = vst.msk [vmem:[#allocation2 + $0x51] sm:$0xff] %vm342_vm1, %v338_v36 }
  0x30   : > { %370 = vst.msk [vmem:[#allocation2 + $0x61] sm:$0xff] %vm342_vm1, %v339_v37  ;;  %371 = vst.msk [vmem:[#allocation2 + $0x71] sm:$0xff] %vm342_vm1, %v340_v39 }
  0x31   : > { %372 = vst.msk [vmem:[#allocation2 + $0x81] sm:$0xff] %vm342_vm1, %v341_v40  ;;  %v1084_v40 = vsel %vm409_vm0, %v285_v27, 0 }
  0x34   : > { %v3003_v43 = vld [vmem:[#allocation2 + $0x11] sm:$0xff] }
  0x35   : > { %v374_v44 = vld [vmem:[#allocation2 + $0x10] sm:$0xff]  ;;  %v3005_v45 = vld [vmem:[#allocation2 + $0x21] sm:$0xff]  ;;  %v393_v46 = vpack.c.bf16 %v3003_v43, %v385_v41 }
  0x36   : > { %v381_v47 = vpack.c.bf16 %v374_v44, %v373_v42  ;;  %v3008_v48 = vld [vmem:[#allocation2 + $0x31] sm:$0xff]  ;;  %v375_v49 = vld [vmem:[#allocation2 + $0x20] sm:$0xff]  ;;  %v766_v33 = vpack.c.bf16 %v3005_v45, %v3003_v43 }
  0x37   : > { %v376_v50 = vld [vmem:[#allocation2 + $0x30] sm:$0xff]  ;;  %v3012_v51 = vpack.c.bf16 %v3008_v48, %v3005_v45  ;;  %v3018_v54 = vld [vmem:[#allocation2 + $0x41] sm:$0xff]  ;;  %2493 = vmatprep.mubr.msk.bf16.mxu0 %vm342_vm1, %v393_v46  ;;  %v666_v8 = vpack.c.bf16 %v375_v49, %v374_v44 }
  0x38   : > { %v3014_v52 = vpack.c.bf16 %v376_v50, %v375_v49  ;;  %v3020_v55 = vld [vmem:[#allocation2 + $0x51] sm:$0xff]  ;;  %v377_v56 = vld [vmem:[#allocation2 + $0x40] sm:$0xff]  ;;  %2503 = vmatprep.mubr.msk.bf16.mxu1 %vm342_vm1, %v381_v47  ;;  %v767_v35 = vpack.c.bf16 %v3018_v54, %v3008_v48 }
  0x39   : > { %v3026_v57 = vpack.c.bf16 %v3020_v55, %v3018_v54  ;;  %v378_v58 = vld [vmem:[#allocation2 + $0x50] sm:$0xff]  ;;  %2494 = vmatmul.mubr.msk.bf16.vlgmr.msra.gmra.mxu0 %vm342_vm1, %v3012_v51  ;;  %v3036_v61 = vld [vmem:[#allocation2 + $0x61] sm:$0xff]  ;;  %v667_v19 = vpack.c.bf16 %v377_v56, %v376_v50 }
  0x3a   : > { %2504 = vmatmul.mubr.msk.bf16.vlgmr.msra.gmra.mxu1 %vm342_vm1, %v3014_v52  ;;  %v3034_v60 = vpack.c.bf16 %v378_v58, %v377_v56  ;;  %2512 = vmatpush3.bf16.msra.mxu0 %v583_v53  ;;  %v3046_v0 = vld [vmem:[#allocation2 + $0x71] sm:$0xff]  ;;  %v379_v1 = vld [vmem:[#allocation2 + $0x60] sm:$0xff]  ;;  %v768_v37 = vpack.c.bf16 %v3036_v61, %v3020_v55 }
  0x3b   : > { %2497 = vmatprep.mubr.msk.bf16.mxu0 %vm342_vm1, %v3026_v57  ;;  %v380_v2 = vld [vmem:[#allocation2 + $0x70] sm:$0xff]  ;;  %2522 = vmatpush3.bf16.msra.mxu1 %v683_v59  ;;  %v3054_v5 = vpack.c.bf16 %v3046_v0, %v3036_v61  ;;  %v560_v12 = vld [vmem:[#allocation2 + $0x22] sm:$0xff]  ;;  %v668_v24 = vpack.c.bf16 %v379_v1, %v378_v58  ;;  %v3140_v58 = vld [vmem:[%s3415_s2 + $0xc] sm:$0xf] }
  0x3c   : > { %2507 = vmatprep.mubr.msk.bf16.mxu1 %vm342_vm1, %v3034_v60  ;;  %v559_v4 = vld [vmem:[#allocation2 + $0x12] sm:$0xff]  ;;  %2675 = vmatprep.subr.msk.bf16.mxu0 %vm409_vm0, %v282_v62  ;;  %v3056_v6 = vpack.c.bf16 %v380_v2, %v379_v1  ;;  %v562_v14 = vld [vmem:[#allocation2 + $0x42] sm:$0xff]  ;;  %3440 = vst [vmem:[#allocation15_spill] sm:$0xff] %v3140_v58 }
  0x3d   : > { %2676 = vmatprep.subr.msk.bf16.mxu1 %vm409_vm0, %v283_v63  ;;  %v566_v7 = vpack.c.bf16 %v559_v4, %v558_v3  ;;  %v561_v13 = vld [vmem:[#allocation2 + $0x32] sm:$0xff]  ;;  %v564_v28 = vld [vmem:[#allocation2 + $0x62] sm:$0xff]  ;;  %v866_v34 = vpack.c.bf16 %v560_v12, %v559_v4 }
  0x3e   : > { %v563_v17 = vld [vmem:[#allocation2 + $0x52] sm:$0xff]  ;;  %v567_v18 = vpack.c.bf16 %v561_v13, %v560_v12  ;;  %v665_v30 = vld [vmem:[#allocation2 + $0x80] sm:$0xff]  ;;  %v867_v36 = vpack.c.bf16 %v562_v14, %v561_v13 }
  0x3f   : > { %v568_v21 = vpack.c.bf16 %v563_v17, %v562_v14  ;;  %v565_v29 = vld [vmem:[#allocation2 + $0x72] sm:$0xff]  ;;  %v669_v32 = vpack.c.bf16 %v665_v30, %v380_v2  ;;  %v868_v39 = vpack.c.bf16 %v564_v28, %v563_v17  ;;  %v286_v41 = vld [vmem:[%s3414_s1 + $0x20] sm:$0xf]  ;;  %v288_v55 = vld [vmem:[%s3415_s2 + $0x4] sm:$0xf] }
  0x40   : > { %v569_v31 = vpack.c.bf16 %v565_v29, %v564_v28  ;;  %v765_v42 = vld [vmem:[#allocation2 + $0x81] sm:$0xff]  ;;  %v1184_v46 = vsel %vm409_vm0, %v286_v41, 0  ;;  %v966_v47 = vld [vmem:[#allocation2 + $0x90] sm:$0xff]  ;;  %v1451_v56 = vsel %vm409_vm0, %v288_v55, 0 }
  0x41   : > { %2498 = vmatmul.mubr.msk.bf16.gmra.mxu0 %vm342_vm1, %v3054_v5  ;;  %v865_v43 = vld [vmem:[#allocation2 + $0x82] sm:$0xff]  ;;  %v769_v44 = vpack.c.bf16 %v765_v42, %v3046_v0  ;;  %v1066_v48 = vld [vmem:[#allocation2 + $0x91] sm:$0xff]  ;;  %v970_v49 = vpack.c.bf16 %v966_v47, %v665_v30 }
  0x42   : > { %2508 = vmatmul.mubr.msk.bf16.gmra.mxu1 %vm342_vm1, %v3056_v6  ;;  %2513 = vmatprep.mubr.msk.bf16.mxu0 %vm342_vm1, %v566_v7  ;;  %v869_v45 = vpack.c.bf16 %v865_v43, %v565_v29  ;;  %v1070_v50 = vpack.c.bf16 %v1066_v48, %v765_v42  ;;  %v287_v53 = vld [vmem:[%s3415_s2] sm:$0xf] }
  0x43   : > { %2523 = vmatprep.mubr.msk.bf16.mxu1 %vm342_vm1, %v666_v8  ;;  %v1351_v54 = vsel %vm409_vm0, %v287_v53, 0 }
  0x49   : > { %2514 = vmatmul.mubr.msk.bf16.vlgmr.msra.gmra.mxu0 %vm342_vm1, %v567_v18 }
  0x4a   : > { %2524 = vmatmul.mubr.msk.bf16.vlgmr.msra.gmra.mxu1 %vm342_vm1, %v667_v19  ;;  %2532 = vmatpush3.bf16.msra.mxu0 %v783_v23 }
  0x4b   : > { %2517 = vmatprep.mubr.msk.bf16.mxu0 %vm342_vm1, %v568_v21  ;;  %2527 = vmatprep.mubr.msk.bf16.mxu1 %vm342_vm1, %v668_v24 }
  0x4c   : > { %2542 = vmatpush3.bf16.msra.mxu1 %v883_v25  ;;  %2677 = vmatprep.subr.msk.bf16.mxu0 %vm409_vm0, %v284_v26 }
  0x4d   : > { %2678 = vmatprep.subr.msk.bf16.mxu1 %vm409_vm0, %v285_v27 }
  0x51   : > { %2518 = vmatmul.mubr.msk.bf16.gmra.mxu0 %vm342_vm1, %v569_v31 }
  0x52   : > { %2528 = vmatmul.mubr.msk.bf16.gmra.mxu1 %vm342_vm1, %v669_v32  ;;  %2533 = vmatprep.mubr.msk.bf16.mxu0 %vm342_vm1, %v766_v33 }
  0x53   : > { %2543 = vmatprep.mubr.msk.bf16.mxu1 %vm342_vm1, %v866_v34 }
  0x59   : > { %2534 = vmatmul.mubr.msk.bf16.vlgmr.msra.gmra.mxu0 %vm342_vm1, %v767_v35 }
  0x5a   : > { %2544 = vmatmul.mubr.msk.bf16.vlgmr.msra.gmra.mxu1 %vm342_vm1, %v867_v36  ;;  %2552 = vmatpush3.bf16.msra.mxu0 %v984_v38 }
  0x5b   : > { %2537 = vmatprep.mubr.msk.bf16.mxu0 %vm342_vm1, %v768_v37  ;;  %2547 = vmatprep.mubr.msk.bf16.mxu1 %vm342_vm1, %v868_v39 }
  0x5c   : > { %2562 = vmatpush3.bf16.msra.mxu1 %v1084_v40  ;;  %2679 = vmatprep.subr.msk.bf16.mxu0 %vm409_vm0, %v286_v41 }
  0x5d   : > { %2680 = vmatprep.subr.msk.bf16.mxu1 %vm409_vm0, %v287_v53 }
  0x61   : > { %2538 = vmatmul.mubr.msk.bf16.gmra.mxu0 %vm342_vm1, %v769_v44 }
  0x62   : > { %2548 = vmatmul.mubr.msk.bf16.gmra.mxu1 %vm342_vm1, %v869_v45  ;;  %2553 = vmatprep.mubr.msk.bf16.mxu0 %vm342_vm1, %v3014_v52 }
  0x63   : > { %2563 = vmatprep.mubr.msk.bf16.mxu1 %vm342_vm1, %v3012_v51  ;;  %v1166_v51 = vld [vmem:[#allocation2 + $0x92] sm:$0xff] }
  0x64   : > { %v1170_v52 = vpack.c.bf16 %v1166_v51, %v865_v43 }
  0x69   : > { %2554 = vmatmul.mubr.msk.bf16.vlgmr.msra.gmra.mxu0 %vm342_vm1, %v3034_v60 }
  0x6a   : > { %2564 = vmatmul.mubr.msk.bf16.vlgmr.msra.gmra.mxu1 %vm342_vm1, %v3026_v57  ;;  %2572 = vmatpush3.bf16.msra.mxu0 %v1184_v46  ;;  %v3133_v57 = vld [vmem:[%s3415_s2 + $0x8] sm:$0xf] }
  0x6b   : > { %2557 = vmatprep.mubr.msk.bf16.mxu0 %vm342_vm1, %v3056_v6  ;;  %2567 = vmatprep.mubr.msk.bf16.mxu1 %vm342_vm1, %v3054_v5  ;;  %3439 = vst [vmem:[#allocation14_spill] sm:$0xff] %v3133_v57 }
  0x6c   : > { %2582 = vmatpush3.bf16.msra.mxu1 %v1351_v54  ;;  %2681 = vmatprep.subr.msk.bf16.mxu0 %vm409_vm0, %v288_v55 }
  0x6d   : > { %2682 = vmatprep.subr.msk.bf16.mxu1 %vm409_vm0, %v3133_v57 }
  0x71   : > { %2558 = vmatmul.mubr.msk.bf16.gmra.mxu0 %vm342_vm1, %v970_v49 }
  0x72   : > { %2568 = vmatmul.mubr.msk.bf16.gmra.mxu1 %vm342_vm1, %v1070_v50  ;;  %2573 = vmatprep.mubr.msk.bf16.mxu0 %vm342_vm1, %v567_v18 }
  0x79   : > { %2574 = vmatmul.mubr.msk.bf16.vlgmr.msra.gmra.mxu0 %vm342_vm1, %v568_v21 }
  0x7a   : > { %2577 = vmatprep.mubr.msk.bf16.mxu0 %vm342_vm1, %v569_v31  ;;  %2592 = vmatpush3.bf16.msra.mxu0 %v1451_v56 }
  0x7b   : > { %2683 = vmatprep.subr.msk.bf16.mxu0 %vm409_vm0, %v3140_v58 }
  0x81   : > { %2578 = vmatmul.mubr.msk.bf16.gmra.mxu0 %vm342_vm1, %v1170_v52 }
  0xf9   : > { %v2495_v59 = vpop.f32.mrf.mxu0 }
  0xfa   : > { %v2505_v60 = vpop.f32.mrf.mxu1 }
  0xfb   : > { %v447_v61 = vpop.f32.mrf.mxu0  ;;  %v536_v48 = vadd.f32 %v2505_v60, %v2495_v59 }
  0xfc   : > { %v527_v62 = vpop.f32.mrf.mxu1 }
  0xfd   : > { %v2496_v63 = vpop.f32.mrf.mxu0  ;;  %v528_v51 = vadd.f32 %v527_v62, %v447_v61 }
  0xfe   : > { %v2506_v0 = vpop.f32.mrf.mxu1 }
  0xff   : > { %v450_v1 = vpop.f32.mrf.mxu0  ;;  %v539_v55 = vadd.f32 %v2506_v0, %v2496_v63 }
 0x100   : > { %v530_v2 = vpop.f32.mrf.mxu1 }
 0x101   : > { %v2499_v3 = vpop.f32.mrf.mxu0  ;;  %v531_v20 = vadd.f32 %v530_v2, %v450_v1 }
 0x102   : > { %v2509_v4 = vpop.f32.mrf.mxu1 }
 0x103   : > { %v463_v5 = vpop.f32.mrf.mxu0  ;;  %v552_v9 = vadd.f32 %v2509_v4, %v2499_v3 }
 0x104   : > { %v543_v6 = vpop.f32.mrf.mxu1 }
 0x105   : > { %v2500_v7 = vpop.f32.mrf.mxu0  ;;  %v544_v60 = vadd.f32 %v543_v6, %v463_v5 }
 0x106   : > { %v2510_v8 = vpop.f32.mrf.mxu1 }
 0x107   : > { %v3144_v12 = vpop.f32.mrf.mxu0 }
 0x108   : > { %v3146_v13 = vpop.f32.mrf.mxu1 }
 0x109   : > { %v2515_v14 = vpop.f32.mrf.mxu0  ;;  %v547_v2 = vadd.f32 %v3146_v13, %v3144_v12 }
 0x10a   : > { %v2525_v17 = vpop.f32.mrf.mxu1  ;;  %v652_v52 = vadd.f32 %v2515_v14, %v536_v48  ;;  %v555_v14 = vadd.f32 %v2510_v8, %v2500_v7 }
 0x10b   : > { %v619_v18 = vpop.f32.mrf.mxu0 }
 0x10c   : > { %v719_v19 = vpop.f32.mrf.mxu1  ;;  %v650_v56 = vadd.f32 %v619_v18, %v528_v51  ;;  %v752_v10 = vadd.f32 %v2525_v17, %v652_v52 }
 0x10d   : > { %v2516_v21 = vpop.f32.mrf.mxu0 }
 0x10e   : > { %v2526_v23 = vpop.f32.mrf.mxu1  ;;  %v653_v15 = vadd.f32 %v2516_v21, %v539_v55  ;;  %v750_v58 = vadd.f32 %v719_v19, %v650_v56 }
 0x10f   : > { %v622_v24 = vpop.f32.mrf.mxu0 }
 0x110   : > { %v722_v25 = vpop.f32.mrf.mxu1  ;;  %v651_v57 = vadd.f32 %v622_v24, %v531_v20  ;;  %v753_v61 = vadd.f32 %v2526_v23, %v653_v15 }
 0x111   : > { %v2519_v26 = vpop.f32.mrf.mxu0 }
 0x112   : > { %v2529_v27 = vpop.f32.mrf.mxu1  ;;  %v751_v0 = vadd.f32 %v722_v25, %v651_v57 }
 0x113   : > { %v635_v28 = vpop.f32.mrf.mxu0 }
 0x114   : > { %v735_v29 = vpop.f32.mrf.mxu1  ;;  %v654_v48 = vadd.f32 %v635_v28, %v544_v60 }
 0x115   : > { %v2520_v30 = vpop.f32.mrf.mxu0 }
 0x116   : > { %v3148_v31 = vpop.f32.mrf.mxu1  ;;  %v657_v4 = vadd.f32 %v2520_v30, %v555_v14 }
 0x117   : > { %v638_v32 = vpop.f32.mrf.mxu0 }
 0x118   : > { %v3150_v33 = vpop.f32.mrf.mxu1  ;;  %v655_v6 = vadd.f32 %v638_v32, %v547_v2  ;;  %v757_v57 = vadd.f32 %v3148_v31, %v657_v4 }
 0x119   : > { %v2535_v34 = vpop.f32.mrf.mxu0 }
 0x11a   : > { %v2545_v35 = vpop.f32.mrf.mxu1  ;;  %v755_v13 = vadd.f32 %v3150_v33, %v655_v6 }
 0x11b   : > { %v819_v36 = vpop.f32.mrf.mxu0 }
 0x11c   : > { %v919_v37 = vpop.f32.mrf.mxu1  ;;  %v850_v62 = vadd.f32 %v819_v36, %v750_v58 }
 0x11d   : > { %v2536_v38 = vpop.f32.mrf.mxu0 }
 0x11e   : > { %v2546_v39 = vpop.f32.mrf.mxu1  ;;  %v853_v51 = vadd.f32 %v2536_v38, %v753_v61 }
 0x11f   : > { %v822_v40 = vpop.f32.mrf.mxu0 }
 0x120   : > { %v922_v41 = vpop.f32.mrf.mxu1  ;;  %v851_v17 = vadd.f32 %v822_v40, %v751_v0  ;;  %v953_v7 = vadd.f32 %v2546_v39, %v853_v51 }
 0x121   : > { %v2539_v42 = vpop.f32.mrf.mxu0 }
 0x122   : > { %v2549_v43 = vpop.f32.mrf.mxu1  ;;  %v951_v24 = vadd.f32 %v922_v41, %v851_v17 }
 0x123   : > { %v835_v44 = vpop.f32.mrf.mxu0 }
 0x124   : > { %v3152_v45 = vpop.f32.mrf.mxu1 }
 0x125   : > { %3441 = vst [vmem:[#allocation16_spill] sm:$0xff] %v3152_v45  ;;  %v2540_v46 = vpop.f32.mrf.mxu0  ;;  %v656_v45 = vadd.f32 %v2519_v26, %v552_v9  ;;  %v754_v9 = vadd.f32 %v735_v29, %v654_v48  ;;  %v3165_v29 = vld [vmem:[%s3418_s5] ss:$0 sm:$0xff] }
 0x126   : > { %v3154_v47 = vpop.f32.mrf.mxu1 }
 0x127   : > { %3442 = vst [vmem:[#allocation17_spill] sm:$0xff] %v3154_v47  ;;  %v838_v49 = vpop.f32.mrf.mxu0  ;;  %v852_v47 = vadd.f32 %v2535_v34, %v752_v10  ;;  %v756_v3 = vadd.f32 %v2529_v27, %v656_v45  ;;  %v950_v10 = vadd.f32 %v919_v37, %v850_v62  ;;  %v854_v21 = vadd.f32 %v835_v44, %v754_v9 }
 0x128   : > { %v3156_v50 = vpop.f32.mrf.mxu1  ;;  %v857_v27 = vadd.f32 %v2540_v46, %v757_v57  ;;  %v855_v36 = vadd.f32 %v838_v49, %v755_v13 }
 0x129   : > { %3443 = vst [vmem:[#allocation18_spill] sm:$0xff] %v3156_v50  ;;  %v2555_v53 = vpop.f32.mrf.mxu0  ;;  %v952_v18 = vadd.f32 %v2545_v35, %v852_v47  ;;  %v856_v15 = vadd.f32 %v2539_v42, %v756_v3 }
 0x12a   : > { %v2565_v54 = vpop.f32.mrf.mxu1 }
 0x12b   : > { %v1020_v22 = vpop.f32.mrf.mxu0  ;;  %v1053_v5 = vadd.f32 %v2555_v53, %v952_v18  ;;  %v956_v26 = vadd.f32 %v2549_v43, %v856_v15 }
 0x12c   : > { %v1120_v16 = vpop.f32.mrf.mxu1  ;;  %v1051_v8 = vadd.f32 %v1020_v22, %v950_v10  ;;  %v3444_v31 = vld [vmem:[#allocation16_spill] sm:$0xff] }
 0x12d   : > { %v2556_v11 = vpop.f32.mrf.mxu0  ;;  %v1153_v25 = vadd.f32 %v2565_v54, %v1053_v5  ;;  %v954_v35 = vadd.f32 %v3444_v31, %v854_v21 }
 0x12e   : > { %v2566_v59 = vpop.f32.mrf.mxu1  ;;  %v1054_v12 = vadd.f32 %v2556_v11, %v953_v7  ;;  %v1151_v30 = vadd.f32 %v1120_v16, %v1051_v8  ;;  %v2357_v11 = vld [vmem:[%s3419_s6] ss:$0 sm:$0xff]  ;;  %v3445_v41 = vld [vmem:[#allocation17_spill] sm:$0xff] }
 0x12f   : > { %v1023_v50 = vpop.f32.mrf.mxu0  ;;  %v957_v42 = vadd.f32 %v3445_v41, %v857_v27 }
 0x130   : > { %v1123_v1 = vpop.f32.mrf.mxu1  ;;  %v1052_v22 = vadd.f32 %v1023_v50, %v951_v24  ;;  %v1154_v38 = vadd.f32 %v2566_v59, %v1054_v12  ;;  %v3446_v50 = vld [vmem:[#allocation18_spill] sm:$0xff]  ;;  %v1326_v24 = vld [vmem:[#allocation3] sm:$0xff] }
 0x131   : > { %v2559_v63 = vpop.f32.mrf.mxu0  ;;  %v955_v52 = vadd.f32 %v3446_v50, %v855_v36 }
 0x132   : > { %v2569_v19 = vpop.f32.mrf.mxu1  ;;  %v1057_v37 = vadd.f32 %v2559_v63, %v956_v26  ;;  %v1152_v44 = vadd.f32 %v1123_v1, %v1052_v22 }
 0x133   : > { %v1036_v20 = vpop.f32.mrf.mxu0 }
 0x134   : > { %v1136_v32 = vpop.f32.mrf.mxu1  ;;  %v1055_v43 = vadd.f32 %v1036_v20, %v954_v35  ;;  %v1157_v53 = vadd.f32 %v2569_v19, %v1057_v37 }
 0x135   : > { %v2560_v58 = vpop.f32.mrf.mxu0 }
 0x136   : > { %v2570_v45 = vpop.f32.mrf.mxu1  ;;  %v1058_v54 = vadd.f32 %v2560_v58, %v957_v42  ;;  %v1155_v62 = vadd.f32 %v1136_v32, %v1055_v43  ;;  %v291_v42 = vld [vmem:[%s3415_s2 + $0x10] sm:$0xf]  ;;  %v292_v43 = vld [vmem:[%s3415_s2 + $0x14] sm:$0xf] }
 0x137   : > { %v1039_v23 = vpop.f32.mrf.mxu0 }
 0x138   : > { %v1056_v14 = vadd.f32 %v1039_v23, %v955_v52  ;;  %v1139_v63 = vpop.f32.mrf.mxu1  ;;  %v1158_v2 = vadd.f32 %v2570_v45, %v1058_v54  ;;  %v1526_v52 = vld [vmem:[#allocation3 + $0x2] sm:$0xff] }
 0x139   : > { %v2575_v28 = vpop.f32.mrf.mxu0 }
 0x13a   : > { %v1253_v34 = vadd.f32 %v2575_v28, %v1153_v25  ;;  %v1156_v5 = vadd.f32 %v1139_v63, %v1056_v14  ;;  %v1426_v25 = vld [vmem:[#allocation3 + $0x1] sm:$0xff] }
 0x13b   : > { %v1220_v33 = vpop.f32.mrf.mxu0 }
 0x13c   : > { %v1268_v39 = vmul.f32 %v3165_v29, %v1253_v34  ;;  %v1251_v40 = vadd.f32 %v1220_v33, %v1151_v30 }
 0x13d   : > { %v2576_v16 = vpop.f32.mrf.mxu0 }
 0x13e   : > { %v1283_v46 = vadd.f32 %v2357_v11, %v1268_v39  ;;  %v1266_v47 = vmul.f32 %v3165_v29, %v1251_v40  ;;  %v1254_v49 = vadd.f32 %v2576_v16, %v1154_v38  ;;  %v3447_v38 = vld [vmem:[#allocation14_spill] sm:$0xff]  ;;  %v3448_v40 = vld [vmem:[#allocation15_spill] sm:$0xff] }
 0x13f   : > { %v1223_v55 = vpop.f32.mrf.mxu0  ;;  %v1551_v39 = vsel %vm409_vm0, %v3447_v38, 0  ;;  %v1651_v41 = vsel %vm409_vm0, %v3448_v40, 0 }
 0x140   : > { %v1291_v56 = vmax.f32 %v1283_v46, 0.0  ;;  %v1281_v59 = vadd.f32 %v2357_v11, %v1266_v47  ;;  %v1269_v60 = vmul.f32 %v3165_v29, %v1254_v49  ;;  %v1252_v61 = vadd.f32 %v1223_v55, %v1152_v44 }
 0x141   : > { %v2579_v48 = vpop.f32.mrf.mxu0 }
 0x142   : > { %1320 = vst.msk [vmem:[#allocation3 + $0x31] sm:$0xff] %vm342_vm1, %v1291_v56  ;;  %v1289_v0 = vmax.f32 %v1281_v59, 0.0  ;;  %v1284_v18 = vadd.f32 %v2357_v11, %v1269_v60  ;;  %v1267_v51 = vmul.f32 %v3165_v29, %v1252_v61  ;;  %v1257_v1 = vadd.f32 %v2579_v48, %v1157_v53 }
 0x143   : > { %v1236_v3 = vpop.f32.mrf.mxu0 }
 0x144   : > { %1318 = vst.msk [vmem:[#allocation3 + $0x11] sm:$0xff] %vm342_vm1, %v1289_v0  ;;  %v1292_v4 = vmax.f32 %v1284_v18, 0.0  ;;  %v1282_v20 = vadd.f32 %v2357_v11, %v1267_v51  ;;  %v1272_v10 = vmul.f32 %v3165_v29, %v1257_v1  ;;  %v1255_v17 = vadd.f32 %v1236_v3, %v1155_v62 }
 0x145   : > { %v2580_v9 = vpop.f32.mrf.mxu0  ;;  %v1751_v51 = vsel %vm409_vm0, %v291_v42, 0  ;;  %v1851_v3 = vsel %vm409_vm0, %v292_v43, 0 }
 0x146   : > { %1321 = vst.msk [vmem:[#allocation3 + $0x41] sm:$0xff] %vm342_vm1, %v1292_v4  ;;  %v1290_v6 = vmax.f32 %v1282_v20, 0.0  ;;  %v1287_v15 = vadd.f32 %v2357_v11, %v1272_v10  ;;  %v1270_v58 = vmul.f32 %v3165_v29, %v1255_v17  ;;  %v1258_v7 = vadd.f32 %v2580_v9, %v1158_v2  ;;  %v293_v20 = vld [vmem:[%s3415_s2 + $0x18] sm:$0xf]  ;;  %v294_v10 = vld [vmem:[%s3415_s2 + $0x1c] sm:$0xf] }
 0x147   : > { %v1239_v8 = vpop.f32.mrf.mxu0 }
 0x148   : > { %1319 = vst.msk [vmem:[#allocation3 + $0x21] sm:$0xff] %vm342_vm1, %v1290_v6  ;;  %v1295_v19 = vmax.f32 %v1287_v15, 0.0  ;;  %v1285_v57 = vadd.f32 %v2357_v11, %v1270_v58  ;;  %v1273_v21 = vmul.f32 %v3165_v29, %v1258_v7  ;;  %v1256_v23 = vadd.f32 %v1239_v8, %v1156_v5 }
 0x149   : > { %v1329_v35 = vld [vmem:[#allocation3 + $0x30] sm:$0xff] }
 0x14a   : > { %1324 = vst.msk [vmem:[#allocation3 + $0x71] sm:$0xff] %vm342_vm1, %v1295_v19  ;;  %v1293_v12 = vmax.f32 %v1285_v57, 0.0  ;;  %v1288_v13 = vadd.f32 %v2357_v11, %v1273_v21  ;;  %v1271_v26 = vmul.f32 %v3165_v29, %v1256_v23  ;;  %v3195_v37 = vld [vmem:[#allocation3 + $0x31] sm:$0xff]  ;;  %v1952_v57 = vsel %vm409_vm0, %v293_v20, 0 }
 0x14b   : > { %v1327_v27 = vld [vmem:[#allocation3 + $0x10] sm:$0xff]  ;;  %v2052_v23 = vsel %vm409_vm0, %v294_v10, 0 }
 0x14c   : > { %v3186_v28 = vld [vmem:[#allocation3 + $0x11] sm:$0xff]  ;;  %1322 = vst.msk [vmem:[#allocation3 + $0x51] sm:$0xff] %vm342_vm1, %v1293_v12  ;;  %v1296_v30 = vmax.f32 %v1288_v13, 0.0  ;;  %v1286_v22 = vadd.f32 %v2357_v11, %v1271_v26  ;;  %v1334_v32 = vpack.c.bf16 %v1327_v27, %v1326_v24 }
 0x14d   : > { %v1434_v34 = vpack.c.bf16 %v3186_v28, %v1426_v25  ;;  %v1330_v16 = vld [vmem:[#allocation3 + $0x40] sm:$0xff]  ;;  %v1527_v53 = vld [vmem:[#allocation3 + $0x12] sm:$0xff] }
 0x14e   : > { %1325 = vst.msk [vmem:[#allocation3 + $0x81] sm:$0xff] %vm342_vm1, %v1296_v30  ;;  %v1294_v31 = vmax.f32 %v1286_v22, 0.0  ;;  %2583 = vmatprep.mubr.msk.bf16.mxu1 %vm342_vm1, %v1334_v32  ;;  %v1430_v45 = vld [vmem:[#allocation3 + $0x41] sm:$0xff]  ;;  %v1534_v61 = vpack.c.bf16 %v1527_v53, %v1526_v52  ;;  %v1529_v63 = vld [vmem:[#allocation3 + $0x32] sm:$0xff]  ;;  %v1635_v18 = vpack.c.bf16 %v1330_v16, %v1329_v35 }
 0x14f   : > { %2593 = vmatprep.mubr.msk.bf16.mxu0 %vm342_vm1, %v1434_v34  ;;  %v1328_v36 = vld [vmem:[#allocation3 + $0x20] sm:$0xff]  ;;  %v1735_v8 = vpack.c.bf16 %v1430_v45, %v3195_v37  ;;  %v1934_v30 = vld [vmem:[#allocation3 + $0x90] sm:$0xff] }
 0x150   : > { %v3193_v29 = vld [vmem:[#allocation3 + $0x21] sm:$0xff]  ;;  %1323 = vst.msk [vmem:[#allocation3 + $0x61] sm:$0xff] %vm342_vm1, %v1294_v31  ;;  %v3198_v33 = vpack.c.bf16 %v1329_v35, %v1328_v36  ;;  %v1634_v62 = vpack.c.bf16 %v1328_v36, %v1327_v27  ;;  %v2034_v22 = vld [vmem:[#allocation3 + $0x91] sm:$0xff] }
 0x151   : > { %v3202_v11 = vpack.c.bf16 %v3195_v37, %v3193_v29  ;;  %v1333_v50 = vld [vmem:[#allocation3 + $0x70] sm:$0xff]  ;;  %v1528_v14 = vld [vmem:[#allocation3 + $0x22] sm:$0xff]  ;;  %v1734_v58 = vpack.c.bf16 %v3193_v29, %v3186_v28 }
 0x152   : > { %2584 = vmatmul.mubr.msk.bf16.vlgmr.msra.gmra.mxu1 %vm342_vm1, %v3198_v33  ;;  %v1433_v56 = vld [vmem:[#allocation3 + $0x71] sm:$0xff]  ;;  %v1535_v0 = vpack.c.bf16 %v1529_v63, %v1528_v14  ;;  %v1530_v1 = vld [vmem:[#allocation3 + $0x42] sm:$0xff]  ;;  %v1834_v7 = vpack.c.bf16 %v1528_v14, %v1527_v53 }
 0x153   : > { %2594 = vmatmul.mubr.msk.bf16.vlgmr.msra.gmra.mxu0 %vm342_vm1, %v3202_v11  ;;  %2602 = vmatpush3.bf16.msra.mxu1 %v1551_v39  ;;  %v1331_v44 = vld [vmem:[#allocation3 + $0x50] sm:$0xff]  ;;  %v1835_v19 = vpack.c.bf16 %v1530_v1, %v1529_v63  ;;  %v295_v25 = vld [vmem:[%s3415_s2 + $0x20] sm:$0xf] }
 0x154   : > { %v3218_v46 = vld [vmem:[#allocation3 + $0x51] sm:$0xff]  ;;  %2612 = vmatpush3.bf16.msra.mxu0 %v1651_v41  ;;  %v3220_v47 = vpack.c.bf16 %v1331_v44, %v1330_v16  ;;  %2684 = vmatprep.subr.msk.bf16.mxu1 %vm409_vm0, %v291_v42  ;;  %v2152_v28 = vsel %vm409_vm0, %v295_v25, 0 }
 0x155   : > { %v3223_v49 = vpack.c.bf16 %v3218_v46, %v1430_v45  ;;  %2685 = vmatprep.subr.msk.bf16.mxu0 %vm409_vm0, %v292_v43  ;;  %v1531_v48 = vld [vmem:[#allocation3 + $0x52] sm:$0xff]  ;;  %v1633_v5 = vld [vmem:[#allocation3 + $0x80] sm:$0xff] }
 0x156   : > { %2587 = vmatprep.mubr.msk.bf16.mxu1 %vm342_vm1, %v3220_v47  ;;  %v1536_v2 = vpack.c.bf16 %v1531_v48, %v1530_v1  ;;  %v1533_v9 = vld [vmem:[#allocation3 + $0x72] sm:$0xff]  ;;  %v1637_v15 = vpack.c.bf16 %v1633_v5, %v1333_v50  ;;  %v1733_v12 = vld [vmem:[#allocation3 + $0x81] sm:$0xff]  ;;  %v1938_v32 = vpack.c.bf16 %v1934_v30, %v1633_v5 }
 0x157   : > { %2597 = vmatprep.mubr.msk.bf16.mxu0 %vm342_vm1, %v3223_v49  ;;  %v1332_v54 = vld [vmem:[#allocation3 + $0x60] sm:$0xff]  ;;  %v1737_v26 = vpack.c.bf16 %v1733_v12, %v1433_v56  ;;  %v2038_v34 = vpack.c.bf16 %v2034_v22, %v1733_v12  ;;  %v2134_v31 = vld [vmem:[#allocation3 + $0x92] sm:$0xff]  ;;  %v3455_v22 = vld [vmem:[#allocation12_spill] sm:$0xff] }
 0x158   : > { %v1432_v55 = vld [vmem:[#allocation3 + $0x61] sm:$0xff]  ;;  %v3231_v59 = vpack.c.bf16 %v1333_v50, %v1332_v54  ;;  %v1636_v4 = vpack.c.bf16 %v1332_v54, %v1331_v44 }
 0x159   : > { %v3233_v60 = vpack.c.bf16 %v1433_v56, %v1432_v55  ;;  %v1532_v17 = vld [vmem:[#allocation3 + $0x62] sm:$0xff]  ;;  %v1736_v21 = vpack.c.bf16 %v1432_v55, %v3218_v46 }
 0x15a   : > { %2588 = vmatmul.mubr.msk.bf16.gmra.mxu1 %vm342_vm1, %v3231_v59  ;;  %v1537_v6 = vpack.c.bf16 %v1533_v9, %v1532_v17  ;;  %v1836_v24 = vpack.c.bf16 %v1532_v17, %v1531_v48  ;;  %v1833_v13 = vld [vmem:[#allocation3 + $0x82] sm:$0xff] }
 0x15b   : > { %2598 = vmatmul.mubr.msk.bf16.gmra.mxu0 %vm342_vm1, %v3233_v60  ;;  %2603 = vmatprep.mubr.msk.bf16.mxu1 %vm342_vm1, %v1534_v61  ;;  %v1837_v27 = vpack.c.bf16 %v1833_v13, %v1533_v9  ;;  %v2138_v35 = vpack.c.bf16 %v2134_v31, %v1833_v13 }
 0x15c   : > { %2613 = vmatprep.mubr.msk.bf16.mxu0 %vm342_vm1, %v1634_v62 }
 0x162   : > { %2604 = vmatmul.mubr.msk.bf16.vlgmr.msra.gmra.mxu1 %vm342_vm1, %v1535_v0 }
 0x163   : > { %2614 = vmatmul.mubr.msk.bf16.vlgmr.msra.gmra.mxu0 %vm342_vm1, %v1635_v18  ;;  %2622 = vmatpush3.bf16.msra.mxu1 %v1751_v51 }
 0x164   : > { %2607 = vmatprep.mubr.msk.bf16.mxu1 %vm342_vm1, %v1536_v2  ;;  %2617 = vmatprep.mubr.msk.bf16.mxu0 %vm342_vm1, %v1636_v4 }
 0x165   : > { %2632 = vmatpush3.bf16.msra.mxu0 %v1851_v3  ;;  %2686 = vmatprep.subr.msk.bf16.mxu1 %vm409_vm0, %v293_v20 }
 0x166   : > { %2687 = vmatprep.subr.msk.bf16.mxu0 %vm409_vm0, %v294_v10 }
 0x16a   : > { %2608 = vmatmul.mubr.msk.bf16.gmra.mxu1 %vm342_vm1, %v1537_v6 }
 0x16b   : > { %2618 = vmatmul.mubr.msk.bf16.gmra.mxu0 %vm342_vm1, %v1637_v15  ;;  %2623 = vmatprep.mubr.msk.bf16.mxu1 %vm342_vm1, %v1734_v58 }
 0x16c   : > { %2633 = vmatprep.mubr.msk.bf16.mxu0 %vm342_vm1, %v1834_v7 }
 0x172   : > { %2624 = vmatmul.mubr.msk.bf16.vlgmr.msra.gmra.mxu1 %vm342_vm1, %v1735_v8  ;;  %v3450_v8 = vld [vmem:[#allocation7_spill] sm:$0xff] }
 0x173   : > { %2634 = vmatmul.mubr.msk.bf16.vlgmr.msra.gmra.mxu0 %vm342_vm1, %v1835_v19  ;;  %2642 = vmatpush3.bf16.msra.mxu1 %v1952_v57 }
 0x174   : > { %2627 = vmatprep.mubr.msk.bf16.mxu1 %vm342_vm1, %v1736_v21  ;;  %2637 = vmatprep.mubr.msk.bf16.mxu0 %vm342_vm1, %v1836_v24  ;;  %v3452_v24 = vld [vmem:[#allocation10_spill] sm:$0xff] }
 0x175   : > { %2652 = vmatpush3.bf16.msra.mxu0 %v2052_v23  ;;  %2688 = vmatprep.subr.msk.bf16.mxu1 %vm409_vm0, %v295_v25 }
 0x17a   : > { %2628 = vmatmul.mubr.msk.bf16.gmra.mxu1 %vm342_vm1, %v1737_v26 }
 0x17b   : > { %2638 = vmatmul.mubr.msk.bf16.gmra.mxu0 %vm342_vm1, %v1837_v27  ;;  %2643 = vmatprep.mubr.msk.bf16.mxu1 %vm342_vm1, %v3198_v33  ;;  %v3454_v27 = vld [vmem:[#allocation8_spill] sm:$0xff] }
 0x17c   : > { %2653 = vmatprep.mubr.msk.bf16.mxu0 %vm342_vm1, %v3202_v11 }
 0x182   : > { %2644 = vmatmul.mubr.msk.bf16.vlgmr.msra.gmra.mxu1 %vm342_vm1, %v3220_v47 }
 0x183   : > { %2654 = vmatmul.mubr.msk.bf16.vlgmr.msra.gmra.mxu0 %vm342_vm1, %v3223_v49  ;;  %2662 = vmatpush3.bf16.msra.mxu1 %v2152_v28 }
 0x184   : > { %2647 = vmatprep.mubr.msk.bf16.mxu1 %vm342_vm1, %v3231_v59  ;;  %2657 = vmatprep.mubr.msk.bf16.mxu0 %vm342_vm1, %v3233_v60 }
 0x18a   : > { %2648 = vmatmul.mubr.msk.bf16.gmra.mxu1 %vm342_vm1, %v1938_v32 }
 0x18b   : > { %2658 = vmatmul.mubr.msk.bf16.gmra.mxu0 %vm342_vm1, %v2038_v34  ;;  %2663 = vmatprep.mubr.msk.bf16.mxu1 %vm342_vm1, %v1535_v0 }
 0x192   : > { %2664 = vmatmul.mubr.msk.bf16.vlgmr.msra.gmra.mxu1 %vm342_vm1, %v1536_v2 }
 0x193   : > { %2667 = vmatprep.mubr.msk.bf16.mxu1 %vm342_vm1, %v1537_v6  ;;  %v3449_v6 = vld [vmem:[#allocation9_spill] sm:$0xff] }
 0x19a   : > { %2668 = vmatmul.mubr.msk.bf16.gmra.mxu1 %vm342_vm1, %v2138_v35 }
 0x212   : > { %v2585_v36 = vpop.f32.mrf.mxu1 }
 0x213   : > { %v2595_v29 = vpop.f32.mrf.mxu0  ;;  %v1420_v15 = vadd.f32 %v2585_v36, %v3449_v6 }
 0x214   : > { %v1387_v37 = vpop.f32.mrf.mxu1 }
 0x215   : > { %v1487_v33 = vpop.f32.mrf.mxu0  ;;  %v1418_v19 = vadd.f32 %v1387_v37, %v3450_v8  ;;  %v1520_v23 = vadd.f32 %v2595_v29, %v1420_v15  ;;  %v3456_v37 = vld [vmem:[#allocation11_spill] sm:$0xff] }
 0x216   : > { %v2586_v11 = vpop.f32.mrf.mxu1 }
 0x217   : > { %v2596_v38 = vpop.f32.mrf.mxu0  ;;  %v1421_v25 = vadd.f32 %v2586_v11, %v3452_v24  ;;  %v1518_v26 = vadd.f32 %v1487_v33, %v1418_v19  ;;  %v3457_v33 = vld [vmem:[#allocation13_spill] sm:$0xff] }
 0x218   : > { %v1390_v39 = vpop.f32.mrf.mxu1 }
 0x219   : > { %v1490_v40 = vpop.f32.mrf.mxu0  ;;  %v1419_v28 = vadd.f32 %v1390_v39, %v3454_v27  ;;  %v1521_v35 = vadd.f32 %v2596_v38, %v1421_v25  ;;  %v2731_v27 = vld [vmem:[%s2961_s13 + $0x28] sm:$0xff]  ;;  %s269_s13 = sand.u32 1, %s2784_s25  }
 0x21a   : > { %v2589_v41 = vpop.f32.mrf.mxu1  ;;  %s2315_s22 = sshll.u32 %s269_s13, 6  ;;  %s3373_s28 = scalar_lea.sflag [#allocation5], %s269_s13 }
 0x21b   : > { %v2599_v42 = vpop.f32.mrf.mxu0  ;;  %v1424_v32 = vadd.f32 %v2589_v41, %v3455_v22  ;;  %v1519_v15 = vadd.f32 %v1490_v40, %v1419_v28  ;;  %s3342_s23 = scalar_lea.vmem [#allocation4], %s2315_s22 }
 0x21c   : > { %v1403_v43 = vpop.f32.mrf.mxu1  ;;  %s2249_s8 = sshll.u32 %s3342_s23, 4  ;;  %s3365_s8 = int_to_ptr.vmem [resolvable:$true] %s2249_s8 }
 0x21d   : > { %v1503_v16 = vpop.f32.mrf.mxu0  ;;  %v1422_v6 = vadd.f32 %v1403_v43, %v3456_v37  ;;  %v1524_v24 = vadd.f32 %v2599_v42, %v1424_v32  ;;  %s2732_s16 = scalar_lea.vmem %s3365_s8, 1024  ;;  %p2739_p0 = scmp.lt.s32.totalorder %s3365_s8, %s2737_s18 }
 0x21e   : > { %v2590_v44 = vpop.f32.mrf.mxu1  ;;  %p2733_p11 = scmp.ne.s32.totalorder %s3365_s8, %s2732_s16  ;;  %p2740_p1 = scmp.lt.s32.totalorder %s2738_s19, %s2732_s16 }
 0x21f   : > { %v3294_v45 = vpop.f32.mrf.mxu0  ;;  %v1425_v19 = vadd.f32 %v2590_v44, %v3457_v33  ;;  %v1522_v41 = vadd.f32 %v1503_v16, %v1422_v6 }
 0x220   : > { %v1406_v46 = vpop.f32.mrf.mxu1  ;;  %p2734_p12 = pnand %p2733_p11, %p2876_p5  ;;  %p2741_p2 = por %p2740_p1, %p2739_p0 }
 0x221   : > { %v3296_v47 = vpop.f32.mrf.mxu0  ;;  %v1423_v22 = vadd.f32 %v2731_v27, %v1406_v46  ;;  %v1525_v42 = vadd.f32 %v3294_v45, %v1425_v19 }
 0x222   : > { %v2605_v49 = vpop.f32.mrf.mxu1  ;;  %p2735_p13 = pneg %p2734_p12 }
 0x223   : > { %v2615_v50 = vpop.f32.mrf.mxu0  ;;  %v1620_v30 = vadd.f32 %v2605_v49, %v1520_v23  ;;  %v1523_v44 = vadd.f32 %v3296_v47, %v1423_v22 }
 0x224   : > { %v1587_v52 = vpop.f32.mrf.mxu1  ;;  %p2742_p3 = pnand %p2741_p2, %p2735_p13 }
 0x225   : > { %v1687_v53 = vpop.f32.mrf.mxu0  ;;  %v1618_v36 = vadd.f32 %v1587_v52, %v1518_v26  ;;  %v1720_v11 = vadd.f32 %v2615_v50, %v1620_v30 }
 0x226   : > { %v2606_v54 = vpop.f32.mrf.mxu1 }
 0x227   : > { %v2616_v55 = vpop.f32.mrf.mxu0  ;;  %v1621_v8 = vadd.f32 %v2606_v54, %v1521_v35  ;;  %v1718_v39 = vadd.f32 %v1687_v53, %v1618_v36 }
 0x228   : > { %v1590_v56 = vpop.f32.mrf.mxu1 }
 0x229   : > { %v1690_v59 = vpop.f32.mrf.mxu0  ;;  %v1619_v49 = vadd.f32 %v1590_v56, %v1519_v15  ;;  %v1721_v25 = vadd.f32 %v2616_v55, %v1621_v8 }
 0x22a   : > { %v2609_v60 = vpop.f32.mrf.mxu1 }
 0x22b   : > { %v2619_v61 = vpop.f32.mrf.mxu0  ;;  %v1624_v38 = vadd.f32 %v2609_v60, %v1524_v24  ;;  %v1719_v54 = vadd.f32 %v1690_v59, %v1619_v49 }
 0x22c   : > { %v1603_v62 = vpop.f32.mrf.mxu1 }
 0x22d   : > { %v3298_v14 = vpop.f32.mrf.mxu0  ;;  %v1622_v26 = vadd.f32 %v1603_v62, %v1522_v41  ;;  %v1724_v53 = vadd.f32 %v2619_v61, %v1624_v38 }
 0x22e   : > { %v2610_v48 = vpop.f32.mrf.mxu1 }
 0x22f   : > { %v3300_v63 = vpop.f32.mrf.mxu0  ;;  %v1625_v56 = vadd.f32 %v2610_v48, %v1525_v42  ;;  %v1722_v55 = vadd.f32 %v3298_v14, %v1622_v26 }
 0x230   : > { %v3302_v0 = vpop.f32.mrf.mxu1 }
 0x231   : > { %v3304_v18 = vpop.f32.mrf.mxu0  ;;  %v1623_v62 = vadd.f32 %v3302_v0, %v1523_v44  ;;  %v1725_v61 = vadd.f32 %v3300_v63, %v1625_v56 }
 0x232   : > { %v2625_v51 = vpop.f32.mrf.mxu1 }
 0x233   : > { %v2635_v1 = vpop.f32.mrf.mxu0  ;;  %v1820_v23 = vadd.f32 %v2625_v51, %v1720_v11 }
 0x234   : > { %v1787_v2 = vpop.f32.mrf.mxu1 }
 0x235   : > { %v1887_v3 = vpop.f32.mrf.mxu0  ;;  %v1818_v43 = vadd.f32 %v1787_v2, %v1718_v39  ;;  %v1920_v28 = vadd.f32 %v2635_v1, %v1820_v23 }
 0x236   : > { %v2626_v4 = vpop.f32.mrf.mxu1 }
 0x237   : > { %v2636_v20 = vpop.f32.mrf.mxu0  ;;  %v1821_v30 = vadd.f32 %v2626_v4, %v1721_v25  ;;  %v1918_v46 = vadd.f32 %v1887_v3, %v1818_v43 }
 0x238   : > { %v1790_v10 = vpop.f32.mrf.mxu1 }
 0x239   : > { %v3306_v17 = vpop.f32.mrf.mxu0  ;;  %v1819_v60 = vadd.f32 %v1790_v10, %v1719_v54  ;;  %v1921_v59 = vadd.f32 %v2636_v20, %v1821_v30 }
 0x23a   : > { %v2629_v5 = vpop.f32.mrf.mxu1 }
 0x23b   : > { %v3308_v9 = vpop.f32.mrf.mxu0  ;;  %v1824_v2 = vadd.f32 %v2629_v5, %v1724_v53  ;;  %v1919_v48 = vadd.f32 %v3306_v17, %v1819_v60 }
 0x23c   : > { %v1803_v58 = vpop.f32.mrf.mxu1 }
 0x23d   : > { %v3311_v7 = vpop.f32.mrf.mxu0  ;;  %v1822_v4 = vadd.f32 %v1803_v58, %v1722_v55  ;;  %v1924_v14 = vadd.f32 %v3308_v9, %v1824_v2 }
 0x23e   : > { %v3314_v57 = vpop.f32.mrf.mxu1 }
 0x23f   : > { %v3316_v21 = vpop.f32.mrf.mxu0  ;;  %v1825_v35 = vadd.f32 %v3314_v57, %v1725_v61  ;;  %v1922_v58 = vadd.f32 %v3311_v7, %v1822_v4 }
 0x240   : > { %3451 = vst [vmem:[#allocation16_spill] sm:$0xff] %v3316_v21  ;;  %v3319_v12 = vpop.f32.mrf.mxu1 }
 0x241   : > { %v3321_v13 = vpop.f32.mrf.mxu0 }
 0x242   : > { %3453 = vst [vmem:[#allocation17_spill] sm:$0xff] %v3321_v13  ;;  %v2645_v34 = vpop.f32.mrf.mxu1 }
 0x243   : > { %v2655_v31 = vpop.f32.mrf.mxu0  ;;  %v2021_v51 = vadd.f32 %v2645_v34, %v1920_v28  ;;  %v1723_v34 = vadd.f32 %v3304_v18, %v1623_v62 }
 0x244   : > { %v1988_v29 = vpop.f32.mrf.mxu1 }
 0x245   : > { %v2088_v21 = vpop.f32.mrf.mxu0  ;;  %v2019_v1 = vadd.f32 %v1988_v29, %v1918_v46  ;;  %v2121_v3 = vadd.f32 %v2655_v31, %v2021_v51  ;;  %v1823_v63 = vadd.f32 %v3319_v12, %v1723_v34 }
 0x246   : > { %v2646_v13 = vpop.f32.mrf.mxu1 }
 0x247   : > { %v2656_v40 = vpop.f32.mrf.mxu0  ;;  %v2022_v10 = vadd.f32 %v2646_v13, %v1921_v59  ;;  %v2119_v20 = vadd.f32 %v2088_v21, %v2019_v1  ;;  %v3458_v21 = vld [vmem:[#allocation16_spill] sm:$0xff] }
 0x248   : > { %v1991_v52 = vpop.f32.mrf.mxu1  ;;  %v1925_v13 = vadd.f32 %v3458_v21, %v1825_v35 }
 0x249   : > { %v2091_v32 = vpop.f32.mrf.mxu0  ;;  %v2020_v36 = vadd.f32 %v1991_v52, %v1919_v48  ;;  %v2122_v29 = vadd.f32 %v2656_v40, %v2022_v10  ;;  %v3459_v11 = vld [vmem:[#allocation17_spill] sm:$0xff] }
 0x24a   : > { %v2649_v50 = vpop.f32.mrf.mxu1  ;;  %v1923_v8 = vadd.f32 %v3459_v11, %v1823_v63 }
 0x24b   : > { %v2659_v0 = vpop.f32.mrf.mxu0  ;;  %v2025_v17 = vadd.f32 %v2649_v50, %v1924_v14  ;;  %v2120_v31 = vadd.f32 %v2091_v32, %v2020_v36 }
 0x24c   : > { %v2004_v16 = vpop.f32.mrf.mxu1 }
 0x24d   : > { %v2104_v9 = vpop.f32.mrf.mxu0  ;;  %v2023_v7 = vadd.f32 %v2004_v16, %v1922_v58  ;;  %v2125_v24 = vadd.f32 %v2659_v0, %v2025_v17 }
 0x24e   : > { %v2650_v45 = vpop.f32.mrf.mxu1 }
 0x24f   : > { %v2026_v33 = vadd.f32 %v2650_v45, %v1925_v13  ;;  %v2660_v39 = vpop.f32.mrf.mxu0  ;;  %v2123_v23 = vadd.f32 %v2104_v9, %v2023_v7 }
 0x250   : > { %v2007_v47 = vpop.f32.mrf.mxu1 }
 0x251   : > { %v2024_v41 = vadd.f32 %v2007_v47, %v1923_v8  ;;  %v2126_v38 = vadd.f32 %v2660_v39, %v2026_v33  ;;  %v2107_v25 = vpop.f32.mrf.mxu0 }
 0x252   : > { %v2665_v5 = vpop.f32.mrf.mxu1 }
 0x253   : > { %v2221_v37 = vadd.f32 %v2665_v5, %v2121_v3  ;;  %v2124_v26 = vadd.f32 %v2107_v25, %v2024_v41 }
 0x254   : > { %v2188_v6 = vpop.f32.mrf.mxu1 }
 0x255   : > { %2229 = vst.msk [vmem:[%s3342_s23 + $0x10] sm:$0xff] %vm342_vm1, %v2221_v37  ;;  %v2219_v18 = vadd.f32 %v2188_v6, %v2119_v20 }
 0x256   : > { %v2666_v57 = vpop.f32.mrf.mxu1 }
 0x257   : > { %2227 = vst.msk [vmem:[%s3342_s23] sm:$0xff] %vm342_vm1, %v2219_v18  ;;  %v2222_v12 = vadd.f32 %v2666_v57, %v2122_v29 }
 0x258   : > { %v2191_v15 = vpop.f32.mrf.mxu1 }
 0x259   : > { %2230 = vst.msk [vmem:[%s3342_s23 + $0x18] sm:$0xff] %vm342_vm1, %v2222_v12  ;;  %v2220_v19 = vadd.f32 %v2191_v15, %v2120_v31 }
 0x25a   : > { %v2669_v49 = vpop.f32.mrf.mxu1 }
 0x25b   : > { %2228 = vst.msk [vmem:[%s3342_s23 + $0x8] sm:$0xff] %vm342_vm1, %v2220_v19  ;;  %v2225_v27 = vadd.f32 %v2669_v49, %v2125_v24 }
 0x25c   : > { %v2204_v22 = vpop.f32.mrf.mxu1 }
 0x25d   : > { %2233 = vst.msk [vmem:[%s3342_s23 + $0x30] sm:$0xff] %vm342_vm1, %v2225_v27  ;;  %v2223_v52 = vadd.f32 %v2204_v22, %v2123_v23 }
 0x25e   : > { %v2670_v43 = vpop.f32.mrf.mxu1 }
 0x25f   : > { %2231 = vst.msk [vmem:[%s3342_s23 + $0x20] sm:$0xff] %vm342_vm1, %v2223_v52  ;;  %v2226_v40 = vadd.f32 %v2670_v43, %v2126_v38 }
 0x260   : > { %v2207_v50 = vpop.f32.mrf.mxu1 }
 0x261   : > { %2234 = vst.msk [vmem:[%s3342_s23 + $0x38] sm:$0xff] %vm342_vm1, %v2226_v40  ;;  %v2224_v42 = vadd.f32 %v2207_v50, %v2124_v26 }
 0x263   : > { %2232 = vst.msk [vmem:[%s3342_s23 + $0x28] sm:$0xff] %vm342_vm1, %v2224_v42 }
 0x264   : > { %2745 = shalt.err (!%p2742_p3)
}
 0x265   : > { %s2746_s20 = scalar_lea.hbm %s3363_s15, 1024  ;;  %s2750_s22 = scalar_lea.hbm %s3420_s7, 2048 }
 0x266   : > { %p2747_p4 = scmp.ne.s32.totalorder %s3363_s15, %s2746_s20  ;;  %p2751_p9 = scmp.lt.s32.totalorder %s3363_s15, %s3420_s7 }
 0x267   : > { %p2752_p10 = scmp.lt.s32.totalorder %s2750_s22, %s2746_s20 }
 0x268   : > { %p2748_p7 = pnand %p2747_p4, %p2876_p5 }
 0x269   : > { %p2753_p11 = por %p2752_p10, %p2751_p9 }
 0x26a   : > { %p2749_p8 = pneg %p2748_p7 }
 0x26c   : > { %p2754_p12 = pnand %p2753_p11, %p2749_p8 }
 0x26e   : > { %2757 = shalt.err (!%p2754_p12)
}
 0x26f   : > { %s2796_s9 = smov 128   ;;  %s2797_s14 = smov 8  }
 0x270   : > { %2689 = dma.vmem_to_hbm [thread:$0]  (%p2876_p5), %s3365_s8, 1024, %s3363_s15, %s3373_s28, %s2796_s9, %s2796_s9, %s2797_s14  }
 0x271 PF: > { %p2695_p13 = scmp.ge.s32.totalorder %s2792_s27, 2  ;;  %s2264_s16 = sand.u32 1, %s2780_s24  }
 0x272   : > { %s2265_s17 = scalar_lea.sflag [#allocation5], %s2264_s16 }
 0x273   : > { %p2692_p0 = pnand %p2695_p13, %p2880_p6 }
 0x275   : > { %p2693_p1 = pneg %p2692_p0 }
 0x277   : > { %2775 = dma.done.wait (%p2693_p1), %s2265_s17, 1024  }
 0x278   : > { %2777 = vsyncadd (%p2693_p1), %s2265_s17, 4294966272  ;;  %p17_p2 = scmp.ge.s32.totalorder %s2863_s30, 4   ;;  %s3460_s24 = smov %s2784_s25 }
 0x279   : > { %s3461_s25 = smov %s2788_s26  ;;  %s3462_s26 = smov %s2874_s10 }
 0x27a   : > { %s3463_s27 = smov %s2863_s30  ;;  %19 = sbr.rel (!%p17_p2) target bundleno = 3 (0x3), region = 87 }
 0x27f   :  { %2270 = vsyncpa [#allocation5], 1 }
 0x280   :  { %2272 = vsyncpa [#allocation5 + $0x1], 1 }

</bundles_post_ra>
